<compile_context>
chip_gen: v7x
topology: tpu7x:2x2x1
jax: 0.10.0
libtpu: 0.0.40
codegen_flags: <defaults>
</compile_context>

<pallas_src>
import jax
import jax.numpy as jnp
from jax.experimental import pallas as pl
from jax.experimental.pallas import tpu as pltpu

# ----------------------------- problem sizes --------------------------------
N_BATCH  = 2      # batch
C_IN     = 4      # input channels
H = W    = 8      # spatial
S        = H * W  # tokens per image (N*S = 128 fills the MXU sublane dim)
DIM      = 32     # backbone feature dim (NetVLAD `dim`)
K_CLUST  = 8      # NetVLAD `num_clusters`
EPS      = 1e-12  # F.normalize eps
POOL_PAD = 128    # lane-dense width for the pool output (first DIM lanes valid)


def _make_kernel(inv_s):
    """Kernel closure; inv_s = 1/S for the global-average-pool scaling."""

    def embednet_kernel(x_ref, w0_ref, b0_ref, wc_ref, bc_ref, centf_ref,
                        psel_ref, r_ref, rt_ref, t_ref, ipad_ref,
                        pool_ref, vlad_ref):
        f32 = jnp.float32

        # ---- base_model: 1x1 conv + ReLU over all N*S tokens at once ------
        # TODO(synk): real base_model (truncated VGG16) is a deep conv stack; it is
        # represented by a single 1x1 conv + ReLU + GAP with identical output contract.
        feat = jnp.dot(x_ref[...], w0_ref[...], preferred_element_type=f32)
        feat = jnp.maximum(feat + b0_ref[...], 0.0)                      # (NS, D)

        psel = psel_ref[...]                                             # (N, NS) 0/1 image selector

        # pool_x = per-image global average pool, zero-padded to 128 lanes
        pool = jnp.dot(psel, feat, preferred_element_type=f32) * inv_s   # (N, D)
        pool_ref[...] = jnp.dot(pool, ipad_ref[...],
                                preferred_element_type=f32).astype(pool_ref.dtype)  # (N, 128)

        # ---- NetVLAD -------------------------------------------------------
        # normalize_input=True: L2-normalize each descriptor over channels.
        # rsqrt(max(sumsq, eps^2)) == 1/max(norm, eps)  (F.normalize semantics).
        ssq = jnp.sum(feat * feat, axis=1, keepdims=True)                # (NS, 1)
        xn = feat * jax.lax.rsqrt(jnp.maximum(ssq, EPS * EPS))           # (NS, D)

        # soft assignment: 1x1 conv to K logits, softmax over clusters
        logits = jnp.dot(xn, wc_ref[...], preferred_element_type=f32) + bc_ref[...]  # (NS, K)
        mx = jnp.max(logits, axis=1, keepdims=True)
        ex = jnp.exp(logits - mx)
        sa = ex * pl.reciprocal(jnp.sum(ex, axis=1, keepdims=True), approx=True)     # (NS, K)

        # residual aggregation, computed directly in the flattened (K*D) lane layout:
        #   sa_e[t, k*D+d] = sa[t, k]   (sa @ R)
        #   xn_t[t, k*D+d] = xn[t, d]   (xn @ T)
        #   vlad[n, k*D+d] = sum_{t in image n} sa_e*xn_t - (sum_t sa_e) * cent_flat
        sa_e = jnp.dot(sa, r_ref[...], preferred_element_type=f32)       # (NS, K*D)
        xn_t = jnp.dot(xn, t_ref[...], preferred_element_type=f32)       # (NS, K*D)
        agg  = jnp.dot(psel, sa_e * xn_t, preferred_element_type=f32)    # (N, K*D)
        asum = jnp.dot(psel, sa_e, preferred_element_type=f32)           # (N, K*D)
        vlad = agg - asum * centf_ref[...]                               # (N, K*D)

        # ---- EmbedNet tail ('netvlad' strategy) ----------------------------
        # intra-normalization over dim=2 (per cluster): per-cluster sum of squares
        # gathered with R^T, expanded back with R (both MXU ops).
        css = jnp.dot(vlad * vlad, rt_ref[...], preferred_element_type=f32)   # (N, K)
        inv_rn = jax.lax.rsqrt(jnp.maximum(css, EPS * EPS))                   # (N, K)
        vlad = vlad * jnp.dot(inv_rn, r_ref[...], preferred_element_type=f32)

        # flatten (already flat) + global L2 normalization
        tsq = jnp.sum(vlad * vlad, axis=1, keepdims=True)                     # (N, 1)
        vlad = vlad * jax.lax.rsqrt(jnp.maximum(tsq, EPS * EPS))

        vlad_ref[...] = vlad.astype(vlad_ref.dtype)                           # (N, K*D)

    return embednet_kernel


def embednet_forward(x_nchw, w0, b0, wc, bc, centroids):
    n, c_in, h, w = x_nchw.shape
    s = h * w
    ns = n * s
    d = w0.shape[1]
    k = wc.shape[1]
    kd = k * d
    assert d <= POOL_PAD

    # --- wrapper-side layout plumbing (pure reshapes / pads) ----------------
    # NCHW -> channels-last tokens with the batch folded onto the sublane axis.
    # Pad the tiny contraction dim C_IN up to a sublane multiple (>= 8).
    c_pad = max(8, -(-c_in // 8) * 8)
    x_tok = jnp.transpose(x_nchw, (0, 2, 3, 1)).reshape(ns, c_in)
    x_tok = jnp.pad(x_tok, ((0, 0), (0, c_pad - c_in)))
    w0p = jnp.pad(w0, ((0, c_pad - c_in), (0, 0)))

    # Constant structure matrices (shape-only; folded by XLA, resident in VMEM).
    psel = (jnp.arange(ns, dtype=jnp.int32)[None, :] // s
            == jnp.arange(n, dtype=jnp.int32)[:, None]).astype(jnp.float32)        # (N, NS)
    r_mat = jnp.kron(jnp.eye(k, dtype=jnp.float32), jnp.ones((1, d), jnp.float32))  # (K, K*D)
    t_mat = jnp.kron(jnp.ones((1, k), jnp.float32), jnp.eye(d, dtype=jnp.float32))  # (D, K*D)
    rt_mat = r_mat.T                                                                # (K*D, K)
    ipad = jnp.pad(jnp.eye(d, dtype=jnp.float32), ((0, 0), (0, POOL_PAD - d)))      # (D, 128)
    cent_flat = centroids.reshape(1, kd)                                            # (1, K*D)

    vmem = pl.BlockSpec(memory_space=pltpu.MemorySpace.VMEM)
    pool_pad, vlad_flat = pl.pallas_call(
        _make_kernel(1.0 / s),
        out_shape=(
            jax.ShapeDtypeStruct((n, POOL_PAD), jnp.float32),   # pool_x (lanes 0:D valid)
            jax.ShapeDtypeStruct((n, kd), jnp.float32),         # vlad_x, already flattened
        ),
        in_specs=[vmem] * 11,
        out_specs=(vmem, vmem),
    )(x_tok, w0p, b0, wc, bc, cent_flat, psel, r_mat, rt_mat, t_mat, ipad)

    return pool_pad[:, :d], vlad_flat


def embednet_reference(x_nchw, w0, b0, wc, bc, centroids):
    """Plain-JAX reference of the same forward pass (for a numerical check)."""
    hp = jax.lax.Precision.HIGHEST
    n, c, h, w = x_nchw.shape
    s = h * w
    d = w0.shape[1]
    k = wc.shape[1]
    x = jnp.transpose(x_nchw, (0, 2, 3, 1)).reshape(n, s, c)
    feat = jnp.maximum(jnp.einsum('nsc,cd->nsd', x, w0, precision=hp) + b0, 0.0)
    pool = jnp.mean(feat, axis=1)
    xn = feat / jnp.maximum(jnp.linalg.norm(feat, axis=2, keepdims=True), EPS)
    logits = jnp.einsum('nsd,dk->nsk', xn, wc, precision=hp) + bc
    sa = jax.nn.softmax(logits, axis=2)
    agg = jnp.einsum('nsk,nsd->nkd', sa, xn, precision=hp)
    vlad = agg - jnp.sum(sa, axis=1)[:, :, None] * centroids[None]
    vlad = vlad / jnp.maximum(jnp.linalg.norm(vlad, axis=2, keepdims=True), EPS)
    vlad = vlad.reshape(n, k * d)
    vlad = vlad / jnp.maximum(jnp.linalg.norm(vlad, axis=1, keepdims=True), EPS)
    return pool, vlad


if __name__ == "__main__":
    key = jax.random.PRNGKey(0)
    kx, k0, k1, k2, k3, k4 = jax.random.split(key, 6)

    # deterministic synthetic parameters (shapes follow the module __init__s)
    x = jax.random.normal(kx, (N_BATCH, C_IN, H, W), dtype=jnp.float32)
    w0 = jax.random.normal(k0, (C_IN, DIM), dtype=jnp.float32) * 0.1     # base 1x1 conv
    b0 = jax.random.normal(k1, (1, DIM), dtype=jnp.float32) * 0.01
    wc = jax.random.normal(k2, (DIM, K_CLUST), dtype=jnp.float32) * 0.1  # NetVLAD conv
    bc = jax.random.normal(k3, (1, K_CLUST), dtype=jnp.float32) * 0.01
    centroids = jax.random.uniform(k4, (K_CLUST, DIM), dtype=jnp.float32)

    pool_x, vlad_x = jax.jit(embednet_forward)(x, w0, b0, wc, bc, centroids)
    jax.block_until_ready((pool_x, vlad_x))

    assert pool_x.shape == (N_BATCH, DIM)
    assert vlad_x.shape == (N_BATCH, K_CLUST * DIM)

    # numerical check vs the plain-JAX reference (loose tol for approx reciprocal)
    ref_pool, ref_vlad = embednet_reference(x, w0, b0, wc, bc, centroids)
    assert float(jnp.max(jnp.abs(pool_x - ref_pool))) < 2e-3
    assert float(jnp.max(jnp.abs(vlad_x - ref_vlad))) < 2e-3

    print("KERNEL_OK")
</pallas_src>

<mosaic_0001>
module attributes {stable_mosaic.version = 11 : i64} {
  func.func @embednet_kernel(%arg0: memref<128x8xf32, #tpu.memory_space<vmem>>, %arg1: memref<8x32xf32, #tpu.memory_space<vmem>>, %arg2: memref<1x32xf32, #tpu.memory_space<vmem>>, %arg3: memref<32x8xf32, #tpu.memory_space<vmem>>, %arg4: memref<1x8xf32, #tpu.memory_space<vmem>>, %arg5: memref<1x256xf32, #tpu.memory_space<vmem>>, %arg6: memref<2x128xf32, #tpu.memory_space<vmem>>, %arg7: memref<8x256xf32, #tpu.memory_space<vmem>>, %arg8: memref<256x8xf32, #tpu.memory_space<vmem>>, %arg9: memref<32x256xf32, #tpu.memory_space<vmem>>, %arg10: memref<32x128xf32, #tpu.memory_space<vmem>>, %arg11: memref<2x128xf32, #tpu.memory_space<vmem>>, %arg12: memref<2x256xf32, #tpu.memory_space<vmem>>) attributes {dimension_semantics = [], scalar_prefetch = 0 : i64, scratch_operands = 0 : i64, tpu.core_type = #tpu.core_type<tc>} {
    %c0 = arith.constant 0 : index
    %c0_0 = arith.constant 0 : index
    %0 = vector.load %arg0[%c0, %c0_0] : memref<128x8xf32, #tpu.memory_space<vmem>>, vector<128x8xf32>
    %c0_1 = arith.constant 0 : index
    %c0_2 = arith.constant 0 : index
    %1 = vector.load %arg1[%c0_1, %c0_2] : memref<8x32xf32, #tpu.memory_space<vmem>>, vector<8x32xf32>
    %cst = arith.constant dense<0.000000e+00> : vector<128x32xf32>
    %2 = tpu.matmul %0, %1, %cst {dimension_numbers = #tpu.dot_dimension_numbers<[1], [0], [0], [1], [0, 0, 1, 1], [], []>} : vector<128x8xf32>, vector<8x32xf32>, vector<128x32xf32> -> vector<128x32xf32>
    %c0_3 = arith.constant 0 : index
    %c0_4 = arith.constant 0 : index
    %3 = vector.load %arg2[%c0_3, %c0_4] : memref<1x32xf32, #tpu.memory_space<vmem>>, vector<1x32xf32>
    %4 = vector.broadcast %3 : vector<1x32xf32> to vector<128x32xf32>
    %5 = arith.addf %2, %4 : vector<128x32xf32>
    %cst_5 = arith.constant 0.000000e+00 : f32
    %6 = vector.broadcast %cst_5 : f32 to vector<128x32xf32>
    %7 = arith.maximumf %5, %6 : vector<128x32xf32>
    %c0_6 = arith.constant 0 : index
    %c0_7 = arith.constant 0 : index
    %8 = vector.load %arg6[%c0_6, %c0_7] : memref<2x128xf32, #tpu.memory_space<vmem>>, vector<2x128xf32>
    %cst_8 = arith.constant dense<0.000000e+00> : vector<2x32xf32>
    %9 = tpu.matmul %8, %7, %cst_8 {dimension_numbers = #tpu.dot_dimension_numbers<[1], [0], [0], [1], [0, 0, 1, 1], [], []>} : vector<2x128xf32>, vector<128x32xf32>, vector<2x32xf32> -> vector<2x32xf32>
    %cst_9 = arith.constant 1.562500e-02 : f32
    %10 = vector.broadcast %cst_9 : f32 to vector<2x32xf32>
    %11 = arith.mulf %9, %10 : vector<2x32xf32>
    %c0_10 = arith.constant 0 : index
    %c0_11 = arith.constant 0 : index
    %12 = vector.load %arg10[%c0_10, %c0_11] : memref<32x128xf32, #tpu.memory_space<vmem>>, vector<32x128xf32>
    %cst_12 = arith.constant dense<0.000000e+00> : vector<2x128xf32>
    %13 = tpu.matmul %11, %12, %cst_12 {dimension_numbers = #tpu.dot_dimension_numbers<[1], [0], [0], [1], [0, 0, 1, 1], [], []>} : vector<2x32xf32>, vector<32x128xf32>, vector<2x128xf32> -> vector<2x128xf32>
    %c0_13 = arith.constant 0 : index
    %c0_14 = arith.constant 0 : index
    %14 = vector.load %arg11[%c0_13, %c0_14] : memref<2x128xf32, #tpu.memory_space<vmem>>, vector<2x128xf32>
    tpu.vector_store %arg11[%c0_13, %c0_14], %13 {strides = array<i32>} : memref<2x128xf32, #tpu.memory_space<vmem>>, vector<2x128xf32>,
    %15 = arith.mulf %7, %7 : vector<128x32xf32>
    %cst_15 = arith.constant dense<0.000000e+00> : vector<128xf32>
    %16 = vector.multi_reduction <add>, %15, %cst_15 [1] : vector<128x32xf32> to vector<128xf32>
    %17 = vector.shape_cast %16 : vector<128xf32> to vector<128x1xf32>
    %cst_16 = arith.constant 1.000000e-24 : f32
    %18 = vector.broadcast %cst_16 : f32 to vector<128x1xf32>
    %19 = arith.maximumf %17, %18 : vector<128x1xf32>
    %20 = math.rsqrt %19 : vector<128x1xf32>
    %21 = vector.broadcast %20 : vector<128x1xf32> to vector<128x32xf32>
    %22 = arith.mulf %7, %21 : vector<128x32xf32>
    %c0_17 = arith.constant 0 : index
    %c0_18 = arith.constant 0 : index
    %23 = vector.load %arg3[%c0_17, %c0_18] : memref<32x8xf32, #tpu.memory_space<vmem>>, vector<32x8xf32>
    %cst_19 = arith.constant dense<0.000000e+00> : vector<128x8xf32>
    %24 = tpu.matmul %22, %23, %cst_19 {dimension_numbers = #tpu.dot_dimension_numbers<[1], [0], [0], [1], [0, 0, 1, 1], [], []>} : vector<128x32xf32>, vector<32x8xf32>, vector<128x8xf32> -> vector<128x8xf32>
    %c0_20 = arith.constant 0 : index
    %c0_21 = arith.constant 0 : index
    %25 = vector.load %arg4[%c0_20, %c0_21] : memref<1x8xf32, #tpu.memory_space<vmem>>, vector<1x8xf32>
    %26 = vector.broadcast %25 : vector<1x8xf32> to vector<128x8xf32>
    %27 = arith.addf %24, %26 : vector<128x8xf32>
    %cst_22 = arith.constant dense<0xFF800000> : vector<128xf32>
    %28 = vector.multi_reduction <maximumf>, %27, %cst_22 [1] : vector<128x8xf32> to vector<128xf32>
    %29 = vector.shape_cast %28 : vector<128xf32> to vector<128x1xf32>
    %30 = vector.broadcast %29 : vector<128x1xf32> to vector<128x8xf32>
    %31 = arith.subf %27, %30 : vector<128x8xf32>
    %32 = math.exp %31 : vector<128x8xf32>
    %cst_23 = arith.constant dense<0.000000e+00> : vector<128xf32>
    %33 = vector.multi_reduction <add>, %32, %cst_23 [1] : vector<128x8xf32> to vector<128xf32>
    %34 = vector.shape_cast %33 : vector<128xf32> to vector<128x1xf32>
    %35 = tpu.reciprocal %34 {approx = true} : vector<128x1xf32> -> vector<128x1xf32>
    %36 = vector.broadcast %35 : vector<128x1xf32> to vector<128x8xf32>
    %37 = arith.mulf %32, %36 : vector<128x8xf32>
    %c0_24 = arith.constant 0 : index
    %c0_25 = arith.constant 0 : index
    %38 = vector.load %arg7[%c0_24, %c0_25] : memref<8x256xf32, #tpu.memory_space<vmem>>, vector<8x256xf32>
    %cst_26 = arith.constant dense<0.000000e+00> : vector<128x256xf32>
    %39 = tpu.matmul %37, %38, %cst_26 {dimension_numbers = #tpu.dot_dimension_numbers<[1], [0], [0], [1], [0, 0, 1, 1], [], []>} : vector<128x8xf32>, vector<8x256xf32>, vector<128x256xf32> -> vector<128x256xf32>
    %c0_27 = arith.constant 0 : index
    %c0_28 = arith.constant 0 : index
    %40 = vector.load %arg9[%c0_27, %c0_28] : memref<32x256xf32, #tpu.memory_space<vmem>>, vector<32x256xf32>
    %cst_29 = arith.constant dense<0.000000e+00> : vector<128x256xf32>
    %41 = tpu.matmul %22, %40, %cst_29 {dimension_numbers = #tpu.dot_dimension_numbers<[1], [0], [0], [1], [0, 0, 1, 1], [], []>} : vector<128x32xf32>, vector<32x256xf32>, vector<128x256xf32> -> vector<128x256xf32>
    %42 = arith.mulf %39, %41 : vector<128x256xf32>
    %cst_30 = arith.constant dense<0.000000e+00> : vector<2x256xf32>
    %43 = tpu.matmul %8, %42, %cst_30 {dimension_numbers = #tpu.dot_dimension_numbers<[1], [0], [0], [1], [0, 0, 1, 1], [], []>} : vector<2x128xf32>, vector<128x256xf32>, vector<2x256xf32> -> vector<2x256xf32>
    %cst_31 = arith.constant dense<0.000000e+00> : vector<2x256xf32>
    %44 = tpu.matmul %8, %39, %cst_31 {dimension_numbers = #tpu.dot_dimension_numbers<[1], [0], [0], [1], [0, 0, 1, 1], [], []>} : vector<2x128xf32>, vector<128x256xf32>, vector<2x256xf32> -> vector<2x256xf32>
    %c0_32 = arith.constant 0 : index
    %c0_33 = arith.constant 0 : index
    %45 = vector.load %arg5[%c0_32, %c0_33] : memref<1x256xf32, #tpu.memory_space<vmem>>, vector<1x256xf32>
    %46 = vector.broadcast %45 : vector<1x256xf32> to vector<2x256xf32>
    %47 = arith.mulf %44, %46 : vector<2x256xf32>
    %48 = arith.subf %43, %47 : vector<2x256xf32>
    %49 = arith.mulf %48, %48 : vector<2x256xf32>
    %c0_34 = arith.constant 0 : index
    %c0_35 = arith.constant 0 : index
    %50 = vector.load %arg8[%c0_34, %c0_35] : memref<256x8xf32, #tpu.memory_space<vmem>>, vector<256x8xf32>
    %cst_36 = arith.constant dense<0.000000e+00> : vector<2x8xf32>
    %51 = tpu.matmul %49, %50, %cst_36 {dimension_numbers = #tpu.dot_dimension_numbers<[1], [0], [0], [1], [0, 0, 1, 1], [], []>} : vector<2x256xf32>, vector<256x8xf32>, vector<2x8xf32> -> vector<2x8xf32>
    %cst_37 = arith.constant 1.000000e-24 : f32
    %52 = vector.broadcast %cst_37 : f32 to vector<2x8xf32>
    %53 = arith.maximumf %51, %52 : vector<2x8xf32>
    %54 = math.rsqrt %53 : vector<2x8xf32>
    %c0_38 = arith.constant 0 : index
    %c0_39 = arith.constant 0 : index
    %55 = vector.load %arg7[%c0_38, %c0_39] : memref<8x256xf32, #tpu.memory_space<vmem>>, vector<8x256xf32>
    %cst_40 = arith.constant dense<0.000000e+00> : vector<2x256xf32>
    %56 = tpu.matmul %54, %55, %cst_40 {dimension_numbers = #tpu.dot_dimension_numbers<[1], [0], [0], [1], [0, 0, 1, 1], [], []>} : vector<2x8xf32>, vector<8x256xf32>, vector<2x256xf32> -> vector<2x256xf32>
    %57 = arith.mulf %48, %56 : vector<2x256xf32>
    %58 = arith.mulf %57, %57 : vector<2x256xf32>
    %cst_41 = arith.constant dense<0.000000e+00> : vector<2xf32>
    %59 = vector.multi_reduction <add>, %58, %cst_41 [1] : vector<2x256xf32> to vector<2xf32>
    %60 = vector.shape_cast %59 : vector<2xf32> to vector<2x1xf32>
    %cst_42 = arith.constant 1.000000e-24 : f32
    %61 = vector.broadcast %cst_42 : f32 to vector<2x1xf32>
    %62 = arith.maximumf %60, %61 : vector<2x1xf32>
    %63 = math.rsqrt %62 : vector<2x1xf32>
    %64 = vector.broadcast %63 : vector<2x1xf32> to vector<2x256xf32>
    %65 = arith.mulf %57, %64 : vector<2x256xf32>
    %c0_43 = arith.constant 0 : index
    %c0_44 = arith.constant 0 : index
    %66 = vector.load %arg12[%c0_43, %c0_44] : memref<2x256xf32, #tpu.memory_space<vmem>>, vector<2x256xf32>
    tpu.vector_store %arg12[%c0_43, %c0_44], %65 {strides = array<i32>} : memref<2x256xf32, #tpu.memory_space<vmem>>, vector<2x256xf32>,
    return
  }
}

</mosaic_0001>

<bundles_post_ra>
// kernel: embednet_forward.1
= control target key start
LH: loop header
LB: loop body
LE: loop exit
PB: predicated region body
PF: predicated region fallthrough
CT: control target
= control target key end

     0   :  { %18 = vsyncpa [#allocation3], 0  ;;  %vm66_vm0 = vcmask 64512   ;;  %s3223_s0 = inlined_call_operand.vmem [shape: f32[128,8], index: 0, kind: input, shape index: {}]   ;;  %s3224_s1 = inlined_call_operand.vmem [shape: f32[8,32], index: 1, kind: input, shape index: {}]   ;;  %s3225_s2 = inlined_call_operand.vmem [shape: f32[1,32], index: 2, kind: input, shape index: {}]   ;;  %s3226_s3 = inlined_call_operand.vmem [shape: f32[32,8], index: 3, kind: input, shape index: {}]   ;;  %s3227_s4 = inlined_call_operand.vmem [shape: f32[1,8], index: 4, kind: input, shape index: {}]   ;;  %s3228_s5 = inlined_call_operand.vmem [shape: f32[1,256], index: 5, kind: input, shape index: {}]   ;;  %s3229_s6 = inlined_call_operand.vmem [shape: f32[2,128], index: 6, kind: input, shape index: {}]   ;;  %s3230_s7 = inlined_call_operand.vmem [shape: f32[8,256], index: 7, kind: input, shape index: {}]   ;;  %s3231_s8 = inlined_call_operand.vmem [shape: f32[256,8], index: 8, kind: input, shape index: {}]   ;;  %s3232_s9 = inlined_call_operand.vmem [shape: f32[32,256], index: 9, kind: input, shape index: {}]   ;;  %s3233_s10 = inlined_call_operand.vmem [shape: f32[32,128], index: 10, kind: input, shape index: {}]   ;;  %s3234_s11 = inlined_call_operand.hbm [shape: f32[2,128], index: 11, kind: output, shape index: {0}]   ;;  %s3235_s12 = inlined_call_operand.hbm [shape: f32[2,256], index: 12, kind: output, shape index: {1}]  }
   0x1   :  { %v58_v0 = vld [vmem:[%s3224_s1] sm:$0xff]  ;;  %v43_v2 = vld [vmem:[%s3223_s0 + $0x8] sm:$0xff]  ;;  %v44_v3 = vld [vmem:[%s3223_s0 + $0x10] sm:$0xff] }
   0x2   :  { %v42_v1 = vld [vmem:[%s3223_s0] sm:$0xff]  ;;  %1886 = vmatprep.subr.mxu0 %v58_v0  ;;  %v45_v4 = vld [vmem:[%s3223_s0 + $0x18] sm:$0xff] }
   0x3   :  { %1888 = vmatprep.mubr.msk.f32.mxu0 %vm66_vm0, %v42_v1  ;;  %1887 = vmatpush3.msra.mxu0 %v58_v0  ;;  %v46_v5 = vld [vmem:[%s3223_s0 + $0x20] sm:$0xff] }
   0x4   :  { %1889 = vmatmul.mubr.msk.f32.vlgmr.msra.gmra.mrb[0].mxu0 %vm66_vm0, %v43_v2 }
   0x5   :  { %1891 = vmatprep.mubr.msk.f32.mxu0 %vm66_vm0, %v44_v3 }
   0x6   :  { %19 = vsyncpa [#allocation5], 0  ;;  %v47_v6 = vld [vmem:[%s3223_s0 + $0x28] sm:$0xff]  ;;  %v48_v7 = vld [vmem:[%s3223_s0 + $0x30] sm:$0xff]  ;;  %v2286_v17 = vmov 0.0|0.0   ;;  %vm352_vm1 = vcmask 261120  }
   0x7   :  { %v49_v8 = vld [vmem:[%s3223_s0 + $0x38] sm:$0xff]  ;;  %v50_v9 = vld [vmem:[%s3223_s0 + $0x40] sm:$0xff]  ;;  %v51_v10 = vld [vmem:[%s3223_s0 + $0x48] sm:$0xff]  ;;  %1990 = vmatprep.subr.bf16.mxu1 %v2286_v17  ;;  %2014 = vmatprep.subr.bf16.mxu0 %v2286_v17  ;;  %vm2287_vm2 = vmmov 0   ;;  %vm1673_vm3 = vcmask 1041408  }
   0x8   :  { %1892 = vmatmul.mubr.msk.f32.gmra.mrb[2].mxu0 %vm66_vm0, %v45_v4  ;;  %v52_v11 = vld [vmem:[%s3223_s0 + $0x50] sm:$0xff]  ;;  %v53_v12 = vld [vmem:[%s3223_s0 + $0x58] sm:$0xff]  ;;  %v54_v13 = vld [vmem:[%s3223_s0 + $0x60] sm:$0xff] }
   0x9   :  { %1894 = vmatprep.mubr.msk.f32.mxu0 %vm66_vm0, %v46_v5  ;;  %v55_v14 = vld [vmem:[%s3223_s0 + $0x68] sm:$0xff]  ;;  %v56_v15 = vld [vmem:[%s3223_s0 + $0x70] sm:$0xff]  ;;  %v57_v16 = vld [vmem:[%s3223_s0 + $0x78] sm:$0xff] }
   0xa   :  { %v2428_v18 = vld [vmem:[%s3225_s2] ss:$0 sm:$0xff] }
   0xc   :  { %1895 = vmatmul.mubr.msk.f32.gmra.mrb[4].mxu0 %vm66_vm0, %v47_v6 }
   0xd   :  { %1897 = vmatprep.mubr.msk.f32.mxu0 %vm66_vm0, %v48_v7 }
  0x10   :  { %1898 = vmatmul.mubr.msk.f32.gmra.mrb[6].mxu0 %vm66_vm0, %v49_v8 }
  0x11   :  { %1900 = vmatprep.mubr.msk.f32.mxu0 %vm66_vm0, %v50_v9 }
  0x14   :  { %1901 = vmatmul.mubr.msk.f32.gmra.mrb[8].mxu0 %vm66_vm0, %v51_v10 }
  0x15   :  { %1903 = vmatprep.mubr.msk.f32.mxu0 %vm66_vm0, %v52_v11 }
  0x18   :  { %1904 = vmatmul.mubr.msk.f32.gmra.mrb[10].mxu0 %vm66_vm0, %v53_v12 }
  0x19   :  { %1906 = vmatprep.mubr.msk.f32.mxu0 %vm66_vm0, %v54_v13 }
  0x1c   :  { %1907 = vmatmul.mubr.msk.f32.gmra.mrb[12].mxu0 %vm66_vm0, %v55_v14 }
  0x1d   :  { %1909 = vmatprep.mubr.msk.f32.mxu0 %vm66_vm0, %v56_v15 }
  0x20   :  { %1910 = vmatmul.mubr.msk.f32.gmra.mrb[14].mxu0 %vm66_vm0, %v57_v16 }
  0xd7   :  { %v1890_v19 = vpop.f32.mrb[0].mxu0 }
  0xd8   :  { %v187_v20 = vadd.f32 %v1890_v19, %v2428_v18  ;;  %v181_v21 = vpop.f32.mrb[1].mxu0 }
  0xd9   :  { %v182_v22 = vadd.f32 %v2428_v18, %v181_v21 }
  0xda   :  { %v2432_v23 = vmax.f32 %v187_v20, 0.0 }
  0xdb   :  { %v2434_v24 = vmax.f32 %v182_v22, 0.0  ;;  %v1893_v25 = vpop.f32.mrb[2].mxu0 }
  0xdc   :  { %v197_v26 = vadd.f32 %v1893_v25, %v2428_v18  ;;  %v191_v27 = vpop.f32.mrb[3].mxu0  ;;  %v428_v35 = vmul.f32 %v2432_v23, %v2432_v23 }
  0xdd   :  { %v192_v28 = vadd.f32 %v2428_v18, %v191_v27  ;;  %v1991_v29 = vpack.c.bf16 %v2432_v23, %v2434_v24  ;;  %v427_v30 = vmul.f32 %v2434_v24, %v2434_v24 }
  0xde   :  { %v2442_v31 = vmax.f32 %v197_v26, 0.0  ;;  %v446_v46 = vsel %vm352_vm1, %v428_v35, 0.0 }
  0xdf   :  { %v2444_v32 = vmax.f32 %v192_v28, 0.0  ;;  %v1896_v33 = vpop.f32.mrb[4].mxu0  ;;  %1992 = vmatpush3.bf16.msra.mxu1 %v1991_v29  ;;  %v443_v34 = vsel %vm352_vm1, %v427_v30, 0.0 }
  0xe0   :  { %v207_v36 = vadd.f32 %v1896_v33, %v2428_v18  ;;  %v201_v37 = vpop.f32.mrb[5].mxu0  ;;  %444 = vadd.xlane.f32.xlu0 %v443_v34  ;;  %1993 = vmatprep.subr.bf16.mxu1 %v2286_v17  ;;  %v430_v38 = vmul.f32 %v2442_v31, %v2442_v31 }
  0xe1   :  { %v202_v39 = vadd.f32 %v2428_v18, %v201_v37  ;;  %v429_v40 = vmul.f32 %v2444_v32, %v2444_v32  ;;  %v1994_v41 = vpack.c.bf16 %v2442_v31, %v2444_v32 }
  0xe2   :  { %v2458_v42 = vmax.f32 %v207_v36, 0.0  ;;  %v452_v49 = vsel %vm352_vm1, %v430_v38, 0.0 }
  0xe3   :  { %v2460_v43 = vmax.f32 %v202_v39, 0.0  ;;  %v1899_v44 = vpop.f32.mrb[6].mxu0  ;;  %v449_v45 = vsel %vm352_vm1, %v429_v40, 0.0  ;;  %1995 = vmatpush3.bf16.msra.mxu1 %v1994_v41 }
  0xe4   :  { %v217_v47 = vadd.f32 %v1899_v44, %v2428_v18  ;;  %v211_v48 = vpop.f32.mrb[7].mxu0  ;;  %450 = vadd.xlane.f32.xlu1 %v449_v45  ;;  %447 = vadd.xlane.f32.xlu0 %v446_v46  ;;  %v432_v52 = vmul.f32 %v2458_v42, %v2458_v42  ;;  %v540_v45 = vld [vmem:[%s3226_s3 + $0x8] sm:$0xff] }
  0xe5   :  { %v212_v50 = vadd.f32 %v2428_v18, %v211_v48  ;;  %v431_v51 = vmul.f32 %v2460_v43, %v2460_v43  ;;  %1996 = vmatprep.subr.bf16.mxu1 %v2286_v17  ;;  %v1997_v53 = vpack.c.bf16 %v2458_v42, %v2460_v43 }
  0xe6   :  { %v2474_v54 = vmax.f32 %v217_v47, 0.0  ;;  %v458_v62 = vsel %vm352_vm1, %v432_v52, 0.0 }
  0xe7   :  { %v2476_v55 = vmax.f32 %v212_v50, 0.0  ;;  %v1902_v56 = vpop.f32.mrb[8].mxu0  ;;  %v455_v57 = vsel %vm352_vm1, %v431_v51, 0.0  ;;  %1998 = vmatpush3.bf16.msra.mxu1 %v1997_v53  ;;  %v2288_v50 = vmov 0.0   ;;  %v276_v53 = vld [vmem:[%s3229_s6] sm:$0x3] }
  0xe8   :  { %v227_v58 = vadd.f32 %v1902_v56, %v2428_v18  ;;  %v221_v59 = vpop.f32.mrb[9].mxu0  ;;  %453 = vadd.xlane.f32.xlu1 %v452_v49  ;;  %456 = vadd.xlane.f32.xlu0 %v455_v57  ;;  %v434_v60 = vmul.f32 %v2474_v54, %v2474_v54  ;;  %v541_v56 = vld [vmem:[%s3226_s3 + $0x10] sm:$0xff]  ;;  %v542_v57 = vld [vmem:[%s3226_s3 + $0x18] sm:$0xff] }
  0xe9   :  { %v222_v61 = vadd.f32 %v2428_v18, %v221_v59  ;;  %v433_v63 = vmul.f32 %v2476_v55, %v2476_v55  ;;  %1999 = vmatprep.subr.bf16.mxu1 %v2286_v17  ;;  %v2000_v0 = vpack.c.bf16 %v2474_v54, %v2476_v55  ;;  %1944 = vmatprep.mubr.msk.f32.mxu1 %vm2287_vm2, %v2288_v50 }
  0xea   :  { %v2489_v1 = vmax.f32 %v227_v58, 0.0  ;;  %v464_v7 = vsel %vm352_vm1, %v434_v60, 0.0  ;;  %1955 = vmatprep.mubr.msk.f32.mxu0 %vm2287_vm2, %v2288_v50  ;;  %v2024_v58 = vpack.c.bf16 %v542_v57, %v541_v56  ;;  %v1131_v60 = vld [vmem:[%s3232_s9 + $0x8] sm:$0xff] }
  0xeb   :  { %v2491_v2 = vmax.f32 %v222_v61, 0.0  ;;  %v1905_v3 = vpop.f32.mrb[10].mxu0  ;;  %v461_v4 = vsel %vm352_vm1, %v433_v63, 0.0  ;;  %2001 = vmatpush3.bf16.msra.mxu1 %v2000_v0  ;;  %v1133_v61 = vld [vmem:[%s3232_s9 + $0x18] sm:$0xff]  ;;  %v348_v63 = vld [vmem:[%s3233_s10] sm:$0xff]  ;;  %v349_v0 = vld [vmem:[%s3233_s10 + $0x8] sm:$0xff] }
  0xec   :  { %v237_v5 = vadd.f32 %v1905_v3, %v2428_v18  ;;  %v231_v6 = vpop.f32.mrb[11].mxu0  ;;  %459 = vadd.xlane.f32.xlu1 %v458_v62  ;;  %462 = vadd.xlane.f32.xlu0 %v461_v4  ;;  %v436_v10 = vmul.f32 %v2489_v1, %v2489_v1  ;;  %v2028_v62 = vpack.c.bf16 %v1133_v61, %v1131_v60  ;;  %v350_v3 = vld [vmem:[%s3233_s10 + $0x10] sm:$0xff] }
  0xed   :  { %v232_v8 = vadd.f32 %v2428_v18, %v231_v6  ;;  %v435_v9 = vmul.f32 %v2491_v2, %v2491_v2  ;;  %2002 = vmatprep.subr.bf16.mxu1 %v2286_v17  ;;  %v2003_v11 = vpack.c.bf16 %v2489_v1, %v2491_v2  ;;  %v2015_v4 = vpack.c.bf16 %v349_v0, %v348_v63 }
  0xee   :  { %v2504_v12 = vmax.f32 %v237_v5, 0.0  ;;  %v470_v22 = vsel %vm352_vm1, %v436_v10, 0.0  ;;  %v351_v5 = vld [vmem:[%s3233_s10 + $0x18] sm:$0xff] }
  0xef   :  { %v2506_v13 = vmax.f32 %v232_v8, 0.0  ;;  %v1908_v14 = vpop.f32.mrb[12].mxu0  ;;  %v467_v15 = vsel %vm352_vm1, %v435_v9, 0.0  ;;  %2004 = vmatpush3.bf16.msra.mxu1 %v2003_v11  ;;  %2016 = vmatpush3.bf16.msra.mxu0 %v2015_v4  ;;  %v2018_v6 = vpack.c.bf16 %v351_v5, %v350_v3 }
  0xf0   :  { %v247_v16 = vadd.f32 %v1908_v14, %v2428_v18  ;;  %v241_v19 = vpop.f32.mrb[13].mxu0  ;;  %465 = vadd.xlane.f32.xlu1 %v464_v7  ;;  %468 = vadd.xlane.f32.xlu0 %v467_v15  ;;  %v438_v20 = vmul.f32 %v2504_v12, %v2504_v12 }
  0xf1   :  { %v242_v21 = vadd.f32 %v2428_v18, %v241_v19  ;;  %v437_v25 = vmul.f32 %v2506_v13, %v2506_v13  ;;  %2005 = vmatprep.subr.bf16.mxu1 %v2286_v17  ;;  %v2006_v26 = vpack.c.bf16 %v2504_v12, %v2506_v13  ;;  %2017 = vmatprep.subr.bf16.mxu0 %v2286_v17 }
  0xf2   :  { %v2519_v27 = vmax.f32 %v247_v16, 0.0  ;;  %v476_v35 = vsel %vm352_vm1, %v438_v20, 0.0 }
  0xf3   :  { %v2521_v28 = vmax.f32 %v242_v21, 0.0  ;;  %v1911_v29 = vpop.f32.mrb[14].mxu0  ;;  %v473_v30 = vsel %vm352_vm1, %v437_v25, 0.0  ;;  %2007 = vmatpush3.bf16.msra.mxu1 %v2006_v26  ;;  %2019 = vmatpush3.bf16.msra.mxu0 %v2018_v6 }
  0xf4   :  { %v257_v33 = vadd.f32 %v1911_v29, %v2428_v18  ;;  %v251_v34 = vpop.f32.mrb[15].mxu0  ;;  %471 = vadd.xlane.f32.xlu1 %v470_v22  ;;  %474 = vadd.xlane.f32.xlu0 %v473_v30  ;;  %v440_v38 = vmul.f32 %v2519_v27, %v2519_v27  ;;  %v1130_v30 = vld [vmem:[%s3232_s9] sm:$0xff] }
  0xf5   :  { %v252_v36 = vadd.f32 %v2428_v18, %v251_v34  ;;  %v439_v37 = vmul.f32 %v2521_v28, %v2521_v28  ;;  %2008 = vmatprep.subr.bf16.mxu1 %v2286_v17  ;;  %v2009_v39 = vpack.c.bf16 %v2519_v27, %v2521_v28  ;;  %v539_v18 = vld [vmem:[%s3226_s3] sm:$0xff] }
  0xf6   :  { %v2534_v40 = vmax.f32 %v257_v33, 0.0  ;;  %v482_v47 = vsel %vm352_vm1, %v440_v38, 0.0  ;;  %v2020_v51 = vpack.c.bf16 %v540_v45, %v539_v18  ;;  %v1132_v33 = vld [vmem:[%s3232_s9 + $0x10] sm:$0xff] }
  0xf7   :  { %v2536_v41 = vmax.f32 %v252_v36, 0.0  ;;  %v479_v44 = vsel %vm352_vm1, %v439_v37, 0.0  ;;  %2010 = vmatpush3.bf16.msra.mxu1 %v2009_v39  ;;  %v1137_v36 = vld [vmem:[%s3232_s9 + $0x38] sm:$0xff]  ;;  %v2030_v45 = vpack.c.bf16 %v1132_v33, %v1130_v30 }
  0xf8   :  { %477 = vadd.xlane.f32.xlu1 %v476_v35  ;;  %480 = vadd.xlane.f32.xlu0 %v479_v44  ;;  %v442_v46 = vmul.f32 %v2534_v40, %v2534_v40 }
  0xf9   :  { %v441_v48 = vmul.f32 %v2536_v41, %v2536_v41  ;;  %2011 = vmatprep.subr.bf16.mxu1 %v2286_v17  ;;  %v2012_v49 = vpack.c.bf16 %v2534_v40, %v2536_v41 }
  0xfa   :  { %v488_v59 = vsel %vm352_vm1, %v442_v46, 0.0 }
  0xfb   :  { %v485_v52 = vsel %vm352_vm1, %v441_v48, 0.0  ;;  %2013 = vmatpush3.bf16.msra.mxu1 %v2012_v49  ;;  %v1134_v48 = vld [vmem:[%s3232_s9 + $0x20] sm:$0xff]  ;;  %v1136_v49 = vld [vmem:[%s3232_s9 + $0x30] sm:$0xff] }
  0xfc   :  { %483 = vadd.xlane.f32.xlu1 %v482_v47  ;;  %486 = vadd.xlane.f32.xlu0 %v485_v52 }
  0xfd   :  { %2021 = vmatprep.subr.bf16.mxu1 %v2020_v51 }
  0xfe   :  { %1945 = vmatmul.mubr.f32.vlgmr.msra.gmra.mrb[0].mxu1 %v276_v53 }
  0xff   :  { %2023 = vmatpush3.bf16.msra.mxu1 %v2020_v51 }
 0x100   :  { %489 = vadd.xlane.f32.xlu1 %v488_v59  ;;  %2025 = vmatprep.subr.bf16.mxu1 %v2024_v58 }
 0x103   :  { %2027 = vmatpush3.bf16.msra.mxu1 %v2024_v58  ;;  %v2034_v58 = vpack.c.bf16 %v1136_v49, %v1134_v48 }
 0x104   :  { %2029 = vmatprep.subr.bf16.mxu1 %v2028_v62 }
 0x16d   :  { %v445_v7 = vpop.xlane.xlu0 %444 }
 0x16e   :  { %v491_v8 = vmax.f32 %v445_v7, 1e-24 }
 0x170   :  { %2137 = vrsqrt.f32 %v491_v8 }
 0x171   :  { %v451_v9 = vpop.xlane.xlu1 %450  ;;  %v448_v10 = vpop.xlane.xlu0 %447 }
 0x172   :  { %v493_v11 = vmax.f32 %v451_v9, 1e-24  ;;  %v492_v14 = vmax.f32 %v448_v10, 1e-24 }
 0x174   :  { %2139 = vrsqrt.f32 %v493_v11 }
 0x175   :  { %2141 = vrsqrt.f32 %v492_v14  ;;  %v454_v15 = vpop.xlane.xlu1 %453  ;;  %v457_v16 = vpop.xlane.xlu0 %456 }
 0x176   :  { %v494_v19 = vmax.f32 %v454_v15, 1e-24  ;;  %v495_v20 = vmax.f32 %v457_v16, 1e-24 }
 0x178   :  { %2143 = vrsqrt.f32 %v494_v19 }
 0x179   :  { %2145 = vrsqrt.f32 %v495_v20  ;;  %v460_v21 = vpop.xlane.xlu1 %459  ;;  %v463_v22 = vpop.xlane.xlu0 %462 }
 0x17a   :  { %v2138_v25 = vpop.eup %2137  ;;  %v496_v17 = vmax.f32 %v460_v21, 1e-24  ;;  %v497_v26 = vmax.f32 %v463_v22, 1e-24 }
 0x17b   :  { %v2586_v29 = vmul.f32 %v2138_v25, %v2434_v24  ;;  %v1135_v24 = vld [vmem:[%s3232_s9 + $0x28] sm:$0xff] }
 0x17c   :  { %2147 = vrsqrt.f32 %v496_v17  ;;  %v2032_v47 = vpack.c.bf16 %v1137_v36, %v1135_v24 }
 0x17d   :  { %2149 = vrsqrt.f32 %v497_v26  ;;  %v466_v34 = vpop.xlane.xlu1 %465  ;;  %v469_v35 = vpop.xlane.xlu0 %468  ;;  %1966 = vmatprep.mubr.msk.f32.mxu1 %vm352_vm1, %v2586_v29 }
 0x17e   :  { %v2140_v37 = vpop.eup %2139  ;;  %v498_v38 = vmax.f32 %v466_v34, 1e-24  ;;  %v499_v39 = vmax.f32 %v469_v35, 1e-24 }
 0x17f   :  { %v2142_v44 = vpop.eup %2141  ;;  %v2603_v18 = vmul.f32 %v2140_v37, %v2444_v32 }
 0x180   :  { %2151 = vrsqrt.f32 %v498_v38  ;;  %v2606_v46 = vmul.f32 %v2142_v44, %v2432_v23 }
 0x181   :  { %2153 = vrsqrt.f32 %v499_v39  ;;  %v472_v51 = vpop.xlane.xlu1 %471  ;;  %v475_v52 = vpop.xlane.xlu0 %474 }
 0x182   :  { %v2144_v53 = vpop.eup %2143  ;;  %v500_v32 = vmax.f32 %v472_v51, 1e-24  ;;  %v501_v56 = vmax.f32 %v475_v52, 1e-24  ;;  %1967 = vmatmul.mubr.msk.f32.vlgmr.msra.gmra.mrb[2].mxu1 %vm352_vm1, %v2606_v46 }
 0x183   :  { %v2146_v23 = vpop.eup %2145  ;;  %1969 = vmatprep.mubr.msk.f32.mxu1 %vm352_vm1, %v2603_v18  ;;  %v2619_v57 = vmul.f32 %v2144_v53, %v2442_v31  ;;  %2031 = vmatpush1.bf16.msra.mxu1 %v2030_v45 }
 0x184   :  { %2155 = vrsqrt.f32 %v500_v32  ;;  %v2622_v59 = vmul.f32 %v2146_v23, %v2460_v43  ;;  %2033 = vmatprep.subr.bf16.mxu1 %v2032_v47 }
 0x185   :  { %2157 = vrsqrt.f32 %v501_v56  ;;  %v478_v60 = vpop.xlane.xlu1 %477  ;;  %v481_v61 = vpop.xlane.xlu0 %480 }
 0x186   :  { %v2148_v62 = vpop.eup %2147  ;;  %v502_v63 = vmax.f32 %v478_v60, 1e-24  ;;  %v503_v0 = vmax.f32 %v481_v61, 1e-24  ;;  %1970 = vmatmul.mubr.msk.f32.gmra.mrb[4].mxu1 %vm352_vm1, %v2619_v57 }
 0x187   :  { %v2150_v3 = vpop.eup %2149  ;;  %1972 = vmatprep.mubr.msk.f32.mxu1 %vm352_vm1, %v2622_v59  ;;  %v528_v31 = vmul.f32 %v2148_v62, %v2458_v42  ;;  %2035 = vmatpush1.bf16.msra.mxu1 %v2034_v58 }
 0x188   :  { %2159 = vrsqrt.f32 %v502_v63  ;;  %v529_v43 = vmul.f32 %v2150_v3, %v2476_v55 }
 0x189   :  { %2161 = vrsqrt.f32 %v503_v0  ;;  %v484_v4 = vpop.xlane.xlu1 %483  ;;  %v487_v5 = vpop.xlane.xlu0 %486 }
 0x18a   :  { %v2152_v6 = vpop.eup %2151  ;;  %v504_v7 = vmax.f32 %v484_v4, 1e-24  ;;  %v505_v8 = vmax.f32 %v487_v5, 1e-24  ;;  %1973 = vmatmul.mubr.msk.f32.gmra.mrb[6].mxu1 %vm352_vm1, %v528_v31 }
 0x18b   :  { %v2154_v9 = vpop.eup %2153  ;;  %1975 = vmatprep.mubr.msk.f32.mxu1 %vm352_vm1, %v529_v43  ;;  %v530_v10 = vmul.f32 %v2152_v6, %v2474_v54 }
 0x18c   :  { %2163 = vrsqrt.f32 %v504_v7  ;;  %v531_v42 = vmul.f32 %v2154_v9, %v2491_v2 }
 0x18d   :  { %2165 = vrsqrt.f32 %v505_v8  ;;  %v490_v11 = vpop.xlane.xlu1 %489 }
 0x18e   :  { %v2156_v14 = vpop.eup %2155  ;;  %v506_v55 = vmax.f32 %v490_v11, 1e-24  ;;  %1976 = vmatmul.mubr.msk.f32.gmra.mrb[8].mxu1 %vm352_vm1, %v530_v10 }
 0x18f   :  { %v2158_v15 = vpop.eup %2157  ;;  %1978 = vmatprep.mubr.msk.f32.mxu1 %vm352_vm1, %v531_v42  ;;  %v532_v16 = vmul.f32 %v2156_v14, %v2489_v1 }
 0x190   :  { %2167 = vrsqrt.f32 %v506_v55  ;;  %v533_v19 = vmul.f32 %v2158_v15, %v2506_v13 }
 0x192   :  { %v2160_v20 = vpop.eup %2159  ;;  %1979 = vmatmul.mubr.msk.f32.gmra.mrb[10].mxu1 %vm352_vm1, %v532_v16 }
 0x193   :  { %v2162_v54 = vpop.eup %2161  ;;  %1981 = vmatprep.mubr.msk.f32.mxu1 %vm352_vm1, %v533_v19  ;;  %v534_v2 = vmul.f32 %v2160_v20, %v2504_v12 }
 0x194   :  { %v535_v21 = vmul.f32 %v2162_v54, %v2521_v28 }
 0x196   :  { %v2164_v22 = vpop.eup %2163  ;;  %1982 = vmatmul.mubr.msk.f32.gmra.mrb[12].mxu1 %vm352_vm1, %v534_v2 }
 0x197   :  { %v2166_v25 = vpop.eup %2165  ;;  %1984 = vmatprep.mubr.msk.f32.mxu1 %vm352_vm1, %v535_v21  ;;  %v536_v1 = vmul.f32 %v2164_v22, %v2519_v27 }
 0x198   :  { %v537_v13 = vmul.f32 %v2166_v25, %v2536_v41 }
 0x19a   :  { %v2168_v17 = vpop.eup %2167  ;;  %1985 = vmatmul.mubr.msk.f32.gmra.mrb[14].mxu1 %vm352_vm1, %v536_v1 }
 0x19b   :  { %1987 = vmatprep.mubr.msk.f32.mxu1 %vm352_vm1, %v537_v13  ;;  %v538_v26 = vmul.f32 %v2168_v17, %v2534_v40  ;;  %v1741_v40 = vld [vmem:[%s3227_s4] ss:$0 sm:$0xff] }
 0x19e   :  { %1988 = vmatmul.mubr.msk.f32.gmra.mrb[16].mxu1 %vm352_vm1, %v538_v26 }
 0x19f   :  { %1202 = vmatprep.mubr.f32.mxu1 %v2288_v50 }
 0x1a2   :  { %1774 = vmatmul.mubr.msk.f32.vlgmr.msra.gmra.mrb[18].mxu1 %vm352_vm1, %v2586_v29 }
 0x1a3   :  { %1208 = vmatprep.mubr.f32.mxu1 %v2288_v50 }
 0x1a6   :  { %1775 = vmatmul.mubr.msk.f32.gmra.mrb[20].mxu1 %vm352_vm1, %v2606_v46 }
 0x1a7   :  { %1214 = vmatprep.mubr.f32.mxu1 %v2288_v50 }
 0x1aa   :  { %1776 = vmatmul.mubr.msk.f32.gmra.mrb[22].mxu1 %vm352_vm1, %v2603_v18 }
 0x1ab   :  { %1220 = vmatprep.mubr.f32.mxu1 %v2288_v50 }
 0x1ae   :  { %1777 = vmatmul.mubr.msk.f32.gmra.mrb[24].mxu1 %vm352_vm1, %v2619_v57 }
 0x1af   :  { %1226 = vmatprep.mubr.f32.mxu1 %v2288_v50 }
 0x1b2   :  { %1778 = vmatmul.mubr.msk.f32.gmra.mrb[26].mxu1 %vm352_vm1, %v2622_v59 }
 0x1b3   :  { %1232 = vmatprep.mubr.f32.mxu1 %v2288_v50 }
 0x1b6   :  { %1779 = vmatmul.mubr.msk.f32.gmra.mrb[28].mxu1 %vm352_vm1, %v528_v31 }
 0x1b7   :  { %1238 = vmatprep.mubr.f32.mxu1 %v2288_v50 }
 0x1ba   :  { %1780 = vmatmul.mubr.msk.f32.gmra.mrb[30].mxu1 %vm352_vm1, %v529_v43 }
 0x1bb   :  { %1244 = vmatprep.mubr.f32.mxu1 %v2288_v50 }
 0x1be   :  { %1781 = vmatmul.mubr.msk.f32.gmra.mrb[32].mxu1 %vm352_vm1, %v530_v10 }
 0x1bf   :  { %1250 = vmatprep.mubr.f32.mxu1 %v2288_v50 }
 0x1c2   :  { %1782 = vmatmul.mubr.msk.f32.gmra.mrb[34].mxu1 %vm352_vm1, %v531_v42 }
 0x1c3   :  { %1256 = vmatprep.mubr.f32.mxu1 %v2288_v50 }
 0x1c6   :  { %1783 = vmatmul.mubr.msk.f32.gmra.mrb[36].mxu1 %vm352_vm1, %v532_v16 }
 0x1c7   :  { %1262 = vmatprep.mubr.f32.mxu1 %v2288_v50 }
 0x1ca   :  { %1784 = vmatmul.mubr.msk.f32.gmra.mrb[38].mxu1 %vm352_vm1, %v533_v19 }
 0x1cb   :  { %1268 = vmatprep.mubr.f32.mxu1 %v2288_v50 }
 0x1ce   :  { %1785 = vmatmul.mubr.msk.f32.gmra.mrb[40].mxu1 %vm352_vm1, %v534_v2 }
 0x1cf   :  { %1274 = vmatprep.mubr.f32.mxu1 %v2288_v50 }
 0x1d1   :  { %v343_v12 = vpop.f32.mrb[0].mxu1 }
 0x1d2   :  { %1786 = vmatmul.mubr.msk.f32.gmra.mrb[42].mxu1 %vm352_vm1, %v535_v21  ;;  %v347_v27 = vmul.f32 0.015625, %v343_v12  ;;  %v1946_v28 = vpop.f32.mrb[1].mxu1 }
 0x1d3   :  { %1280 = vmatprep.mubr.f32.mxu1 %v2288_v50 }
 0x1d4   :  { %1956 = vmatmul.mubr.msk.f32.vlgmr.msra.gmra.mrb[16].mxu0 %vm352_vm1, %v347_v27 }
 0x1d5   :  { %1033 = vmatprep.mubr.f32.mxu0 %v2288_v50 }
 0x1d6   :  { %1787 = vmatmul.mubr.msk.f32.gmra.mrb[44].mxu1 %vm352_vm1, %v536_v1 }
 0x1d7   :  { %1286 = vmatprep.mubr.f32.mxu1 %v2288_v50 }
 0x1da   :  { %1788 = vmatmul.mubr.msk.f32.gmra.mrb[46].mxu1 %vm352_vm1, %v537_v13 }
 0x1db   :  { %1292 = vmatprep.mubr.f32.mxu1 %v2288_v50 }
 0x1de   :  { %1789 = vmatmul.mubr.msk.f32.gmra.mrb[48].mxu1 %vm352_vm1, %v538_v26 }
 0x255   :  { %v1968_v41 = vpop.f32.mrb[2].mxu1 }
 0x256   :  { %v2692_v29 = vadd.f32 %v1968_v41, %v1741_v40  ;;  %v664_v30 = vpop.f32.mrb[3].mxu1 }
 0x257   :  { %v2694_v33 = vadd.f32 %v1741_v40, %v664_v30 }
 0x258   :  { %v746_v34 = vsel %vm66_vm0, %v2692_v29, -inf }
 0x259   :  { %747 = vmax.xlane.f32.xlu1 %v746_v34  ;;  %v1971_v35 = vpop.f32.mrb[4].mxu1  ;;  %v743_v24 = vsel %vm66_vm0, %v2694_v33, -inf }
 0x25a   :  { %v2700_v36 = vadd.f32 %v1971_v35, %v1741_v40  ;;  %v674_v37 = vpop.f32.mrb[5].mxu1  ;;  %744 = vmax.xlane.f32.xlu0 %v743_v24 }
 0x25b   :  { %v2702_v38 = vadd.f32 %v1741_v40, %v674_v37 }
 0x25c   :  { %v752_v39 = vsel %vm66_vm0, %v2700_v36, -inf }
 0x25d   :  { %753 = vmax.xlane.f32.xlu1 %v752_v39  ;;  %v1974_v44 = vpop.f32.mrb[6].mxu1  ;;  %v749_v18 = vsel %vm66_vm0, %v2702_v38, -inf }
 0x25e   :  { %v2708_v45 = vadd.f32 %v1974_v44, %v1741_v40  ;;  %v684_v46 = vpop.f32.mrb[7].mxu1  ;;  %750 = vmax.xlane.f32.xlu0 %v749_v18 }
 0x25f   :  { %v2710_v47 = vadd.f32 %v1741_v40, %v684_v46 }
 0x260   :  { %v758_v48 = vsel %vm66_vm0, %v2708_v45, -inf }
 0x261   :  { %759 = vmax.xlane.f32.xlu1 %v758_v48  ;;  %v1977_v49 = vpop.f32.mrb[8].mxu1  ;;  %v755_v51 = vsel %vm66_vm0, %v2710_v47, -inf }
 0x262   :  { %v2716_v52 = vadd.f32 %v1977_v49, %v1741_v40  ;;  %v694_v53 = vpop.f32.mrb[9].mxu1  ;;  %756 = vmax.xlane.f32.xlu0 %v755_v51 }
 0x263   :  { %v2718_v32 = vadd.f32 %v1741_v40, %v694_v53 }
 0x264   :  { %v764_v56 = vsel %vm66_vm0, %v2716_v52, -inf }
 0x265   :  { %765 = vmax.xlane.f32.xlu1 %v764_v56  ;;  %v1980_v23 = vpop.f32.mrb[10].mxu1  ;;  %v761_v57 = vsel %vm66_vm0, %v2718_v32, -inf }
 0x266   :  { %v2724_v58 = vadd.f32 %v1980_v23, %v1741_v40  ;;  %v704_v59 = vpop.f32.mrb[11].mxu1  ;;  %762 = vmax.xlane.f32.xlu0 %v761_v57 }
 0x267   :  { %v2726_v60 = vadd.f32 %v1741_v40, %v704_v59 }
 0x268   :  { %v770_v61 = vsel %vm66_vm0, %v2724_v58, -inf }
 0x269   :  { %771 = vmax.xlane.f32.xlu1 %v770_v61  ;;  %v1983_v62 = vpop.f32.mrb[12].mxu1  ;;  %v767_v63 = vsel %vm66_vm0, %v2726_v60, -inf }
 0x26a   :  { %v2732_v0 = vadd.f32 %v1983_v62, %v1741_v40  ;;  %v714_v3 = vpop.f32.mrb[13].mxu1  ;;  %768 = vmax.xlane.f32.xlu0 %v767_v63 }
 0x26b   :  { %v2734_v31 = vadd.f32 %v1741_v40, %v714_v3 }
 0x26c   :  { %v776_v43 = vsel %vm66_vm0, %v2732_v0, -inf }
 0x26d   :  { %777 = vmax.xlane.f32.xlu1 %v776_v43  ;;  %v1986_v4 = vpop.f32.mrb[14].mxu1  ;;  %v773_v5 = vsel %vm66_vm0, %v2734_v31, -inf }
 0x26e   :  { %v2740_v6 = vadd.f32 %v1986_v4, %v1741_v40  ;;  %v724_v7 = vpop.f32.mrb[15].mxu1  ;;  %774 = vmax.xlane.f32.xlu0 %v773_v5 }
 0x26f   :  { %v2742_v8 = vadd.f32 %v1741_v40, %v724_v7 }
 0x270   :  { %v782_v9 = vsel %vm66_vm0, %v2740_v6, -inf }
 0x271   :  { %783 = vmax.xlane.f32.xlu1 %v782_v9  ;;  %v1989_v10 = vpop.f32.mrb[16].mxu1  ;;  %v779_v42 = vsel %vm66_vm0, %v2742_v8, -inf }
 0x272   :  { %v2748_v11 = vadd.f32 %v1989_v10, %v1741_v40  ;;  %v734_v14 = vpop.f32.mrb[17].mxu1  ;;  %780 = vmax.xlane.f32.xlu0 %v779_v42 }
 0x273   :  { %v2750_v55 = vadd.f32 %v1741_v40, %v734_v14 }
 0x274   :  { %v788_v15 = vsel %vm66_vm0, %v2748_v11, -inf }
 0x275   :  { %789 = vmax.xlane.f32.xlu1 %v788_v15  ;;  %v2754_v16 = vpop.f32.mrb[18].mxu1  ;;  %v785_v19 = vsel %vm66_vm0, %v2750_v55, -inf }
 0x276   :  { %v2758_v20 = vpop.f32.mrb[19].mxu1  ;;  %786 = vmax.xlane.f32.xlu0 %v785_v19 }
 0x279   :  { %v2760_v54 = vpop.f32.mrb[20].mxu1 }
 0x27a   :  { %v2762_v2 = vpop.f32.mrb[21].mxu1 }
 0x27d   :  { %v2764_v21 = vpop.f32.mrb[22].mxu1 }
 0x27e   :  { %v2766_v22 = vpop.f32.mrb[23].mxu1 }
 0x281   :  { %v2768_v25 = vpop.f32.mrb[24].mxu1 }
 0x282   :  { %v2770_v1 = vpop.f32.mrb[25].mxu1 }
 0x285   :  { %v2772_v13 = vpop.f32.mrb[26].mxu1 }
 0x286   :  { %v2774_v17 = vpop.f32.mrb[27].mxu1 }
 0x289   :  { %v2776_v26 = vpop.f32.mrb[28].mxu1 }
 0x28a   :  { %v2778_v12 = vpop.f32.mrb[29].mxu1 }
 0x28d   :  { %v2780_v27 = vpop.f32.mrb[30].mxu1 }
 0x28e   :  { %v2782_v28 = vpop.f32.mrb[31].mxu1 }
 0x291   :  { %v2784_v40 = vpop.f32.mrb[32].mxu1 }
 0x292   :  { %v2786_v41 = vpop.f32.mrb[33].mxu1 }
 0x295   :  { %v2788_v30 = vpop.f32.mrb[34].mxu1 }
 0x296   :  { %v2790_v34 = vpop.f32.mrb[35].mxu1 }
 0x299   :  { %v2792_v35 = vpop.f32.mrb[36].mxu1 }
 0x29a   :  { %v2794_v24 = vpop.f32.mrb[37].mxu1 }
 0x29d   :  { %v2796_v37 = vpop.f32.mrb[38].mxu1 }
 0x29e   :  { %v2798_v39 = vpop.f32.mrb[39].mxu1 }
 0x2a1   :  { %v2800_v44 = vpop.f32.mrb[40].mxu1 }
 0x2a2   :  { %v2802_v18 = vpop.f32.mrb[41].mxu1 }
 0x2a5   :  { %v2804_v46 = vpop.f32.mrb[42].mxu1 }
 0x2a6   :  { %v2806_v48 = vpop.f32.mrb[43].mxu1 }
 0x2a7   :  { %v422_v49 = vpop.f32.mrb[16].mxu0 }
 0x2a8   :  { %426 = vst [vmem:[#allocation2] sm:$0x3] %v422_v49  ;;  %v1957_v51 = vpop.f32.mrb[17].mxu0 }
 0x2a9   :  { %v2808_v53 = vpop.f32.mrb[44].mxu1 }
 0x2aa   :  { %v2810_v56 = vpop.f32.mrb[45].mxu1 }
 0x2ad   :  { %v2812_v23 = vpop.f32.mrb[46].mxu1 }
 0x2ae   :  { %v2814_v57 = vpop.f32.mrb[47].mxu1 }
 0x2b1   :  { %v2816_v59 = vpop.f32.mrb[48].mxu1 }
 0x2b2   :  { %v2818_v61 = vpop.f32.mrb[49].mxu1 }
 0x2e6   :  { %v748_v62 = vpop.xlane.xlu1 %747 }
 0x2e7   :  { %v792_v63 = vsub.f32 %v2692_v29, %v748_v62  ;;  %v745_v3 = vpop.xlane.xlu0 %744 }
 0x2e8   :  { %v791_v43 = vsub.f32 %v2694_v33, %v745_v3 }
 0x2e9   :  { %v809_v4 = vmul.f32 1.442695, %v792_v63 }
 0x2ea   :  { %v807_v5 = vmul.f32 1.442695, %v791_v43  ;;  %v754_v7 = vpop.xlane.xlu1 %753 }
 0x2eb   :  { %2169 = vpow2.f32 %v809_v4  ;;  %v794_v9 = vsub.f32 %v2700_v36, %v754_v7  ;;  %v751_v10 = vpop.xlane.xlu0 %750 }
 0x2ec   :  { %2171 = vpow2.f32 %v807_v5  ;;  %v793_v42 = vsub.f32 %v2702_v38, %v751_v10 }
 0x2ed   :  { %v813_v14 = vmul.f32 1.442695, %v794_v9 }
 0x2ee   :  { %v811_v15 = vmul.f32 1.442695, %v793_v42  ;;  %v760_v19 = vpop.xlane.xlu1 %759 }
 0x2ef   :  { %2173 = vpow2.f32 %v813_v14  ;;  %v796_v49 = vsub.f32 %v2708_v45, %v760_v19  ;;  %v757_v29 = vpop.xlane.xlu0 %756 }
 0x2f0   :  { %2175 = vpow2.f32 %v811_v15  ;;  %v795_v33 = vsub.f32 %v2710_v47, %v757_v29 }
 0x2f1   :  { %v817_v51 = vmul.f32 1.442695, %v796_v49 }
 0x2f2   :  { %v815_v62 = vmul.f32 1.442695, %v795_v33  ;;  %v766_v63 = vpop.xlane.xlu1 %765 }
 0x2f3   :  { %2177 = vpow2.f32 %v817_v51  ;;  %v798_v36 = vsub.f32 %v2716_v52, %v766_v63  ;;  %v763_v3 = vpop.xlane.xlu0 %762 }
 0x2f4   :  { %2179 = vpow2.f32 %v815_v62  ;;  %v797_v38 = vsub.f32 %v2718_v32, %v763_v3 }
 0x2f5   :  { %v2828_v43 = vpop.eup %2169  ;;  %v821_v4 = vmul.f32 1.442695, %v798_v36 }
 0x2f6   :  { %v2830_v5 = vpop.eup %2171  ;;  %v819_v45 = vmul.f32 1.442695, %v797_v38  ;;  %v772_v7 = vpop.xlane.xlu1 %771  ;;  %v842_v47 = vsel %vm66_vm0, %v2828_v43, 0.0 }
 0x2f7   :  { %2181 = vpow2.f32 %v821_v4  ;;  %v800_v9 = vsub.f32 %v2724_v58, %v772_v7  ;;  %843 = vadd.xlane.f32.xlu1 %v842_v47  ;;  %v769_v10 = vpop.xlane.xlu0 %768  ;;  %v839_v52 = vsel %vm66_vm0, %v2830_v5, 0.0 }
 0x2f8   :  { %2183 = vpow2.f32 %v819_v45  ;;  %v799_v32 = vsub.f32 %v2726_v60, %v769_v10  ;;  %840 = vadd.xlane.f32.xlu0 %v839_v52 }
 0x2f9   :  { %v2838_v42 = vpop.eup %2173  ;;  %v825_v14 = vmul.f32 1.442695, %v800_v9 }
 0x2fa   :  { %v2840_v15 = vpop.eup %2175  ;;  %v823_v19 = vmul.f32 1.442695, %v799_v32  ;;  %v778_v49 = vpop.xlane.xlu1 %777  ;;  %v848_v29 = vsel %vm66_vm0, %v2838_v42, 0.0 }
 0x2fb   :  { %2185 = vpow2.f32 %v825_v14  ;;  %v802_v58 = vsub.f32 %v2732_v0, %v778_v49  ;;  %849 = vadd.xlane.f32.xlu1 %v848_v29  ;;  %v775_v33 = vpop.xlane.xlu0 %774  ;;  %v845_v51 = vsel %vm66_vm0, %v2840_v15, 0.0 }
 0x2fc   :  { %2187 = vpow2.f32 %v823_v19  ;;  %v801_v60 = vsub.f32 %v2734_v31, %v775_v33  ;;  %846 = vadd.xlane.f32.xlu0 %v845_v51 }
 0x2fd   :  { %v2848_v62 = vpop.eup %2177  ;;  %v829_v63 = vmul.f32 1.442695, %v802_v58 }
 0x2fe   :  { %v2850_v36 = vpop.eup %2179  ;;  %v827_v3 = vmul.f32 1.442695, %v801_v60  ;;  %v784_v38 = vpop.xlane.xlu1 %783  ;;  %v854_v4 = vsel %vm66_vm0, %v2848_v62, 0.0 }
 0x2ff   :  { %2189 = vpow2.f32 %v829_v63  ;;  %v804_v0 = vsub.f32 %v2740_v6, %v784_v38  ;;  %855 = vadd.xlane.f32.xlu1 %v854_v4  ;;  %v781_v45 = vpop.xlane.xlu0 %780  ;;  %v851_v7 = vsel %vm66_vm0, %v2850_v36, 0.0 }
 0x300   :  { %2191 = vpow2.f32 %v827_v3  ;;  %v803_v31 = vsub.f32 %v2742_v8, %v781_v45  ;;  %852 = vadd.xlane.f32.xlu0 %v851_v7 }
 0x301   :  { %v2858_v47 = vpop.eup %2181  ;;  %v833_v9 = vmul.f32 1.442695, %v804_v0 }
 0x302   :  { %v2860_v10 = vpop.eup %2183  ;;  %v831_v52 = vmul.f32 1.442695, %v803_v31  ;;  %v790_v32 = vpop.xlane.xlu1 %789  ;;  %v860_v14 = vsel %vm66_vm0, %v2858_v47, 0.0  ;;  %v2895_v31 = vld [vmem:[%s3230_s7 + $0x8] sm:$0xff] }
 0x303   :  { %2193 = vpow2.f32 %v833_v9  ;;  %v806_v6 = vsub.f32 %v2748_v11, %v790_v32  ;;  %861 = vadd.xlane.f32.xlu1 %v860_v14  ;;  %v787_v19 = vpop.xlane.xlu0 %786  ;;  %v857_v49 = vsel %vm66_vm0, %v2860_v10, 0.0  ;;  %969 = vmatprep.subr.mxu0 %v2895_v31 }
 0x304   :  { %2195 = vpow2.f32 %v831_v52  ;;  %v805_v8 = vsub.f32 %v2750_v55, %v787_v19  ;;  %858 = vadd.xlane.f32.xlu0 %v857_v49  ;;  %v2903_v52 = vld [vmem:[%s3230_s7] sm:$0xff] }
 0x305   :  { %v2868_v29 = vpop.eup %2185  ;;  %v837_v58 = vmul.f32 1.442695, %v806_v6  ;;  %970 = vmatpush1.msra.mxu0 %v2903_v52 }
 0x306   :  { %v2870_v33 = vpop.eup %2187  ;;  %v835_v51 = vmul.f32 1.442695, %v805_v8  ;;  %v866_v60 = vsel %vm66_vm0, %v2868_v29, 0.0 }
 0x307   :  { %2197 = vpow2.f32 %v837_v58  ;;  %867 = vadd.xlane.f32.xlu1 %v866_v60  ;;  %v863_v11 = vsel %vm66_vm0, %v2870_v33, 0.0 }
 0x308   :  { %2199 = vpow2.f32 %v835_v51  ;;  %864 = vadd.xlane.f32.xlu0 %v863_v11 }
 0x309   :  { %v2876_v63 = vpop.eup %2189 }
 0x30a   :  { %v2878_v55 = vpop.eup %2191  ;;  %v872_v3 = vsel %vm66_vm0, %v2876_v63, 0.0 }
 0x30b   :  { %873 = vadd.xlane.f32.xlu1 %v872_v3  ;;  %v869_v38 = vsel %vm66_vm0, %v2878_v55, 0.0 }
 0x30c   :  { %870 = vadd.xlane.f32.xlu0 %v869_v38 }
 0x30d   :  { %v2884_v4 = vpop.eup %2193 }
 0x30e   :  { %v2886_v0 = vpop.eup %2195  ;;  %v878_v45 = vsel %vm66_vm0, %v2884_v4, 0.0 }
 0x30f   :  { %879 = vadd.xlane.f32.xlu1 %v878_v45  ;;  %v875_v7 = vsel %vm66_vm0, %v2886_v0, 0.0 }
 0x310   :  { %876 = vadd.xlane.f32.xlu0 %v875_v7 }
 0x311   :  { %v2897_v9 = vpop.eup %2197 }
 0x312   :  { %v2905_v32 = vpop.eup %2199  ;;  %v884_v14 = vsel %vm66_vm0, %v2897_v9, 0.0 }
 0x313   :  { %885 = vadd.xlane.f32.xlu1 %v884_v14  ;;  %v881_v6 = vsel %vm66_vm0, %v2905_v32, 0.0 }
 0x314   :  { %882 = vadd.xlane.f32.xlu0 %v881_v6 }
 0x384   :  { %v844_v19 = vpop.xlane.xlu1 %843 }
 0x385   :  { %v841_v49 = vpop.xlane.xlu0 %840 }
 0x386   :  { %2201 = vrcp.f32 %v841_v49 }
 0x387   :  { %2203 = vrcp.f32 %v844_v19 }
 0x388   :  { %v850_v58 = vpop.xlane.xlu1 %849 }
 0x389   :  { %v847_v8 = vpop.xlane.xlu0 %846 }
 0x38a   :  { %2205 = vrcp.f32 %v847_v8 }
 0x38b   :  { %2207 = vrcp.f32 %v850_v58 }
 0x38c   :  { %v856_v38 = vpop.xlane.xlu1 %855 }
 0x38d   :  { %v853_v11 = vpop.xlane.xlu0 %852 }
 0x38e   :  { %2209 = vrcp.f32 %v853_v11 }
 0x38f   :  { %2211 = vrcp.f32 %v856_v38 }
 0x390   :  { %v2202_v51 = vpop.eup %2201  ;;  %v862_v19 = vpop.xlane.xlu1 %861 }
 0x391   :  { %v903_v60 = vmul.f32 %v2202_v51, %v2830_v5  ;;  %v2204_v3 = vpop.eup %2203  ;;  %v859_v14 = vpop.xlane.xlu0 %858 }
 0x392   :  { %v904_v45 = vmul.f32 %v2204_v3, %v2828_v43  ;;  %2213 = vrcp.f32 %v859_v14 }
 0x393   :  { %1758 = vmatmul.mubr.msk.f32.vlgmr.msra.gmra.mrb[18].mxu0 %vm66_vm0, %v903_v60  ;;  %2215 = vrcp.f32 %v862_v19 }
 0x394   :  { %1039 = vmatprep.mubr.f32.mxu0 %v2288_v50  ;;  %v2206_v7 = vpop.eup %2205 }
 0x395   :  { %v905_v6 = vmul.f32 %v2206_v7, %v2840_v15  ;;  %v2208_v5 = vpop.eup %2207  ;;  %v865_v43 = vpop.xlane.xlu0 %864 }
 0x396   :  { %v906_v49 = vmul.f32 %v2208_v5, %v2838_v42  ;;  %2217 = vrcp.f32 %v865_v43  ;;  %v868_v15 = vpop.xlane.xlu1 %867 }
 0x397   :  { %1759 = vmatmul.mubr.msk.f32.gmra.mrb[20].mxu0 %vm66_vm0, %v904_v45  ;;  %2219 = vrcp.f32 %v868_v15 }
 0x398   :  { %1045 = vmatprep.mubr.f32.mxu0 %v2288_v50  ;;  %v2210_v8 = vpop.eup %2209 }
 0x399   :  { %v907_v58 = vmul.f32 %v2210_v8, %v2850_v36  ;;  %v2212_v51 = vpop.eup %2211  ;;  %v871_v42 = vpop.xlane.xlu0 %870 }
 0x39a   :  { %v908_v60 = vmul.f32 %v2212_v51, %v2848_v62  ;;  %2221 = vrcp.f32 %v871_v42  ;;  %v874_v36 = vpop.xlane.xlu1 %873 }
 0x39b   :  { %1760 = vmatmul.mubr.msk.f32.gmra.mrb[22].mxu0 %vm66_vm0, %v905_v6  ;;  %2223 = vrcp.f32 %v874_v36 }
 0x39c   :  { %1051 = vmatprep.mubr.f32.mxu0 %v2288_v50  ;;  %v2214_v11 = vpop.eup %2213 }
 0x39d   :  { %v909_v3 = vmul.f32 %v2214_v11, %v2860_v10  ;;  %v2216_v38 = vpop.eup %2215  ;;  %v877_v62 = vpop.xlane.xlu0 %876  ;;  %v1508_v11 = vld [vmem:[%s3231_s8 + $0x88] sm:$0xff] }
 0x39e   :  { %v910_v45 = vmul.f32 %v2216_v38, %v2858_v47  ;;  %2225 = vrcp.f32 %v877_v62  ;;  %v880_v10 = vpop.xlane.xlu1 %879  ;;  %v1510_v38 = vld [vmem:[%s3231_s8 + $0x98] sm:$0xff] }
 0x39f   :  { %1761 = vmatmul.mubr.msk.f32.gmra.mrb[24].mxu0 %vm66_vm0, %v906_v49  ;;  %2227 = vrcp.f32 %v880_v10  ;;  %v1494_v62 = vld [vmem:[%s3231_s8 + $0x18] sm:$0xff] }
 0x3a0   :  { %1057 = vmatprep.mubr.f32.mxu0 %v2288_v50  ;;  %v2218_v7 = vpop.eup %2217 }
 0x3a1   :  { %v911_v14 = vmul.f32 %v2218_v7, %v2870_v33  ;;  %v2220_v6 = vpop.eup %2219  ;;  %v883_v47 = vpop.xlane.xlu0 %882  ;;  %v1493_v7 = vld [vmem:[%s3231_s8 + $0x10] sm:$0xff] }
 0x3a2   :  { %v912_v5 = vmul.f32 %v2220_v6, %v2868_v29  ;;  %2229 = vrcp.f32 %v883_v47  ;;  %v886_v33 = vpop.xlane.xlu1 %885  ;;  %v1512_v6 = vld [vmem:[%s3231_s8 + $0xa8] sm:$0xff]  ;;  %v2106_v10 = vpack.c.bf16 %v1494_v62, %v1493_v7 }
 0x3a3   :  { %1762 = vmatmul.mubr.msk.f32.gmra.mrb[26].mxu0 %vm66_vm0, %v907_v58  ;;  %2231 = vrcp.f32 %v886_v33  ;;  %v1496_v47 = vld [vmem:[%s3231_s8 + $0x28] sm:$0xff] }
 0x3a4   :  { %1063 = vmatprep.mubr.f32.mxu0 %v2288_v50  ;;  %v2222_v19 = vpop.eup %2221 }
 0x3a5   :  { %v913_v49 = vmul.f32 %v2222_v19, %v2878_v55  ;;  %v2224_v8 = vpop.eup %2223  ;;  %v1495_v19 = vld [vmem:[%s3231_s8 + $0x20] sm:$0xff] }
 0x3a6   :  { %v914_v43 = vmul.f32 %v2224_v8, %v2876_v63 }
 0x3a7   :  { %1763 = vmatmul.mubr.msk.f32.gmra.mrb[28].mxu0 %vm66_vm0, %v908_v60 }
 0x3a8   :  { %1069 = vmatprep.mubr.f32.mxu0 %v2288_v50  ;;  %v2226_v58 = vpop.eup %2225 }
 0x3a9   :  { %v915_v29 = vmul.f32 %v2226_v58, %v2886_v0  ;;  %v2228_v51 = vpop.eup %2227 }
 0x3aa   :  { %v916_v55 = vmul.f32 %v2228_v51, %v2884_v4  ;;  %v1507_v4 = vld [vmem:[%s3231_s8 + $0x80] sm:$0xff] }
 0x3ab   :  { %1764 = vmatmul.mubr.msk.f32.gmra.mrb[30].mxu0 %vm66_vm0, %v909_v3  ;;  %v2100_v42 = vpack.c.bf16 %v1508_v11, %v1507_v4  ;;  %v1509_v3 = vld [vmem:[%s3231_s8 + $0x90] sm:$0xff] }
 0x3ac   :  { %1075 = vmatprep.mubr.f32.mxu0 %v2288_v50  ;;  %v2230_v15 = vpop.eup %2229 }
 0x3ad   :  { %v917_v63 = vmul.f32 %v2230_v15, %v2905_v32  ;;  %v2232_v60 = vpop.eup %2231  ;;  %v1491_v32 = vld [vmem:[%s3231_s8] sm:$0xff]  ;;  %2101 = vmatprep.subr.bf16.mxu1 %v2100_v42 }
 0x3ae   :  { %v918_v0 = vmul.f32 %v2232_v60, %v2897_v9  ;;  %v1492_v9 = vld [vmem:[%s3231_s8 + $0x8] sm:$0xff] }
 0x3af   :  { %1765 = vmatmul.mubr.msk.f32.gmra.mrb[32].mxu0 %vm66_vm0, %v910_v45  ;;  %v2102_v36 = vpack.c.bf16 %v1492_v9, %v1491_v32  ;;  %v2104_v45 = vpack.c.bf16 %v1510_v38, %v1509_v3 }
 0x3b0   :  { %1081 = vmatprep.mubr.f32.mxu0 %v2288_v50 }
 0x3b1   :  { %2103 = vmatpush3.bf16.msra.mxu1 %v2102_v36 }
 0x3b2   :  { %2105 = vmatprep.subr.bf16.mxu1 %v2104_v45 }
 0x3b3   :  { %1766 = vmatmul.mubr.msk.f32.gmra.mrb[34].mxu0 %vm66_vm0, %v911_v14  ;;  %v1511_v14 = vld [vmem:[%s3231_s8 + $0xa0] sm:$0xff] }
 0x3b4   :  { %1087 = vmatprep.mubr.f32.mxu0 %v2288_v50 }
 0x3b5   :  { %2107 = vmatpush3.bf16.msra.mxu1 %v2106_v10 }
 0x3b7   :  { %1767 = vmatmul.mubr.msk.f32.gmra.mrb[36].mxu0 %vm66_vm0, %v912_v5  ;;  %v2108_v5 = vpack.c.bf16 %v1512_v6, %v1511_v14 }
 0x3b8   :  { %1093 = vmatprep.mubr.f32.mxu0 %v2288_v50 }
 0x3b9   :  { %2109 = vmatprep.subr.bf16.mxu1 %v2108_v5 }
 0x3bb   :  { %1768 = vmatmul.mubr.msk.f32.gmra.mrb[38].mxu0 %vm66_vm0, %v913_v49  ;;  %v2110_v49 = vpack.c.bf16 %v1496_v47, %v1495_v19 }
 0x3bc   :  { %1099 = vmatprep.mubr.f32.mxu0 %v2288_v50 }
 0x3bd   :  { %2111 = vmatpush3.bf16.msra.mxu1 %v2110_v49 }
 0x3bf   :  { %1769 = vmatmul.mubr.msk.f32.gmra.mrb[40].mxu0 %vm66_vm0, %v914_v43 }
 0x3c0   :  { %1105 = vmatprep.mubr.f32.mxu0 %v2288_v50 }
 0x3c3   :  { %1770 = vmatmul.mubr.msk.f32.gmra.mrb[42].mxu0 %vm66_vm0, %v915_v29 }
 0x3c4   :  { %1111 = vmatprep.mubr.f32.mxu0 %v2288_v50 }
 0x3c7   :  { %1771 = vmatmul.mubr.msk.f32.gmra.mrb[44].mxu0 %vm66_vm0, %v916_v55 }
 0x3c8   :  { %1117 = vmatprep.mubr.f32.mxu0 %v2288_v50 }
 0x3cb   :  { %1772 = vmatmul.mubr.msk.f32.gmra.mrb[46].mxu0 %vm66_vm0, %v917_v63 }
 0x3cc   :  { %1123 = vmatprep.mubr.f32.mxu0 %v2288_v50 }
 0x3cf   :  { %1773 = vmatmul.mubr.msk.f32.gmra.mrb[48].mxu0 %vm66_vm0, %v918_v0 }
 0x3d0   :  { %1395 = vmatprep.mubr.f32.mxu0 %v2288_v50 }
 0x466   :  { %v2996_v8 = vpop.f32.mrb[18].mxu0 }
 0x467   :  { %v1299_v33 = vmul.f32 %v2754_v16, %v2996_v8  ;;  %v3000_v43 = vpop.f32.mrb[19].mxu0 }
 0x468   :  { %v1300_v58 = vmul.f32 %v2758_v20, %v3000_v43 }
 0x46a   :  { %v3004_v29 = vpop.f32.mrb[20].mxu0 }
 0x46b   :  { %v1301_v51 = vmul.f32 %v2760_v54, %v3004_v29  ;;  %v2070_v55 = vpack.c.bf16 %v3004_v29, %v2996_v8  ;;  %v3010_v15 = vpop.f32.mrb[21].mxu0  ;;  %v1497_v8 = vld [vmem:[%s3231_s8 + $0x30] sm:$0xff]  ;;  %v1499_v29 = vld [vmem:[%s3231_s8 + $0x40] sm:$0xff] }
 0x46c   :  { %v1302_v63 = vmul.f32 %v2762_v2, %v3010_v15  ;;  %v2068_v16 = vpack.c.bf16 %v3010_v15, %v3000_v43  ;;  %v1516_v43 = vld [vmem:[%s3231_s8 + $0xc8] sm:$0xff] }
 0x46d   :  { %v2038_v60 = vpack.c.bf16 %v1301_v51, %v1299_v33 }
 0x46e   :  { %v2036_v0 = vpack.c.bf16 %v1302_v63, %v1300_v58  ;;  %v3016_v4 = vpop.f32.mrb[22].mxu0 }
 0x46f   :  { %v1303_v20 = vmul.f32 %v2764_v21, %v3016_v4  ;;  %v3020_v11 = vpop.f32.mrb[23].mxu0 }
 0x470   :  { %v1304_v54 = vmul.f32 %v2766_v22, %v3020_v11  ;;  %2037 = vmatprep.subr.bf16.mxu0 %v2036_v0 }
 0x471   :  { %2039 = vmatpush1.bf16.msra.mxu0 %v2038_v60 }
 0x472   :  { %v3024_v32 = vpop.f32.mrb[24].mxu0 }
 0x473   :  { %v1305_v2 = vmul.f32 %v2768_v25, %v3024_v32  ;;  %v2074_v42 = vpack.c.bf16 %v3024_v32, %v3016_v4  ;;  %v3030_v9 = vpop.f32.mrb[25].mxu0  ;;  %v1518_v4 = vld [vmem:[%s3231_s8 + $0xd8] sm:$0xff] }
 0x474   :  { %v1306_v21 = vmul.f32 %v2770_v1, %v3030_v9  ;;  %v2072_v3 = vpack.c.bf16 %v3030_v9, %v3020_v11  ;;  %v1502_v9 = vld [vmem:[%s3231_s8 + $0x58] sm:$0xff] }
 0x475   :  { %v2042_v38 = vpack.c.bf16 %v1305_v2, %v1303_v20 }
 0x476   :  { %v2040_v22 = vpack.c.bf16 %v1306_v21, %v1304_v54  ;;  %v3036_v36 = vpop.f32.mrb[26].mxu0 }
 0x477   :  { %v1307_v45 = vmul.f32 %v2772_v13, %v3036_v36  ;;  %v3040_v7 = vpop.f32.mrb[27].mxu0 }
 0x478   :  { %v1308_v25 = vmul.f32 %v2774_v17, %v3040_v7  ;;  %2041 = vmatprep.subr.bf16.mxu0 %v2040_v22 }
 0x479   :  { %2043 = vmatpush1.bf16.msra.mxu0 %v2042_v38 }
 0x47a   :  { %v3044_v62 = vpop.f32.mrb[28].mxu0 }
 0x47b   :  { %v1309_v1 = vmul.f32 %v2776_v26, %v3044_v62  ;;  %v2078_v14 = vpack.c.bf16 %v3044_v62, %v3036_v36  ;;  %v3050_v6 = vpop.f32.mrb[29].mxu0  ;;  %v1520_v36 = vld [vmem:[%s3231_s8 + $0xe8] sm:$0xff] }
 0x47c   :  { %v1310_v13 = vmul.f32 %v2778_v12, %v3050_v6  ;;  %v2076_v10 = vpack.c.bf16 %v3050_v6, %v3040_v7  ;;  %v1504_v6 = vld [vmem:[%s3231_s8 + $0x68] sm:$0xff] }
 0x47d   :  { %v2046_v5 = vpack.c.bf16 %v1309_v1, %v1307_v45 }
 0x47e   :  { %v2044_v17 = vpack.c.bf16 %v1310_v13, %v1308_v25  ;;  %v3056_v19 = vpop.f32.mrb[30].mxu0 }
 0x47f   :  { %v1311_v47 = vmul.f32 %v2780_v27, %v3056_v19  ;;  %v3060_v49 = vpop.f32.mrb[31].mxu0 }
 0x480   :  { %v1312_v26 = vmul.f32 %v2782_v28, %v3060_v49  ;;  %2045 = vmatprep.subr.bf16.mxu0 %v2044_v17 }
 0x481   :  { %2047 = vmatpush1.bf16.msra.mxu0 %v2046_v5 }
 0x482   :  { %v3064_v33 = vpop.f32.mrb[32].mxu0 }
 0x483   :  { %v1313_v12 = vmul.f32 %v2784_v40, %v3064_v33  ;;  %v2082_v58 = vpack.c.bf16 %v3064_v33, %v3056_v19  ;;  %v3070_v51 = vpop.f32.mrb[33].mxu0  ;;  %v1521_v19 = vld [vmem:[%s3231_s8 + $0xf0] sm:$0xff] }
 0x484   :  { %v1314_v27 = vmul.f32 %v2786_v41, %v3070_v51  ;;  %v2080_v63 = vpack.c.bf16 %v3070_v51, %v3060_v49  ;;  %v1522_v49 = vld [vmem:[%s3231_s8 + $0xf8] sm:$0xff] }
 0x485   :  { %v2050_v60 = vpack.c.bf16 %v1313_v12, %v1311_v47  ;;  %v2128_v33 = vpack.c.bf16 %v1522_v49, %v1521_v19  ;;  %v1506_v51 = vld [vmem:[%s3231_s8 + $0x78] sm:$0xff] }
 0x486   :  { %v2048_v28 = vpack.c.bf16 %v1314_v27, %v1312_v26  ;;  %v3076_v0 = vpop.f32.mrb[34].mxu0 }
 0x487   :  { %v1315_v20 = vmul.f32 %v2788_v30, %v3076_v0  ;;  %v3080_v54 = vpop.f32.mrb[35].mxu0 }
 0x488   :  { %v1316_v40 = vmul.f32 %v2790_v34, %v3080_v54  ;;  %2049 = vmatprep.subr.bf16.mxu0 %v2048_v28 }
 0x489   :  { %2051 = vmatpush1.bf16.msra.mxu0 %v2050_v60 }
 0x48a   :  { %v3084_v2 = vpop.f32.mrb[36].mxu0 }
 0x48b   :  { %v1317_v41 = vmul.f32 %v2792_v35, %v3084_v2  ;;  %v2086_v21 = vpack.c.bf16 %v3084_v2, %v3076_v0  ;;  %v1091_v38 = vpop.f32.mrb[37].mxu0 }
 0x48c   :  { %v1318_v22 = vmul.f32 %v2794_v24, %v1091_v38  ;;  %v2084_v30 = vpack.c.bf16 %v1091_v38, %v3080_v54 }
 0x48d   :  { %v2054_v45 = vpack.c.bf16 %v1317_v41, %v1315_v20 }
 0x48e   :  { %v2052_v25 = vpack.c.bf16 %v1318_v22, %v1316_v40  ;;  %v1095_v1 = vpop.f32.mrb[38].mxu0 }
 0x48f   :  { %v1319_v34 = vmul.f32 %v2796_v37, %v1095_v1  ;;  %v1097_v13 = vpop.f32.mrb[39].mxu0 }
 0x490   :  { %v1320_v5 = vmul.f32 %v2798_v39, %v1097_v13  ;;  %2053 = vmatprep.subr.bf16.mxu0 %v2052_v25 }
 0x491   :  { %2055 = vmatpush1.bf16.msra.mxu0 %v2054_v45 }
 0x492   :  { %v1101_v17 = vpop.f32.mrb[40].mxu0 }
 0x493   :  { %v1321_v35 = vmul.f32 %v2800_v44, %v1101_v17  ;;  %v2090_v47 = vpack.c.bf16 %v1101_v17, %v1095_v1  ;;  %v1103_v26 = vpop.f32.mrb[41].mxu0 }
 0x494   :  { %v1322_v12 = vmul.f32 %v2802_v18, %v1103_v26  ;;  %v2088_v24 = vpack.c.bf16 %v1103_v26, %v1097_v13 }
 0x495   :  { %v2058_v27 = vpack.c.bf16 %v1321_v35, %v1319_v34  ;;  %v1475_v35 = vlaneseq }
 0x496   :  { %v2056_v60 = vpack.c.bf16 %v1322_v12, %v1320_v5  ;;  %v1107_v28 = vpop.f32.mrb[42].mxu0  ;;  %v1473_v12 = vld [vmem:[%s3228_s5] sm:$0x3]  ;;  %s2289_s5 = smov [#allocation2]  }
 0x497   :  { %v1323_v0 = vmul.f32 %v2804_v46, %v1107_v28  ;;  %v1109_v20 = vpop.f32.mrb[43].mxu0 }
 0x498   :  { %v1324_v37 = vmul.f32 %v2806_v48, %v1109_v20  ;;  %2057 = vmatprep.subr.bf16.mxu0 %v2056_v60 }
 0x499   :  { %2059 = vmatpush1.bf16.msra.mxu0 %v2058_v27 }
 0x49a   :  { %v1113_v39 = vpop.f32.mrb[44].mxu0 }
 0x49b   :  { %v1325_v54 = vmul.f32 %v2808_v53, %v1113_v39  ;;  %v2094_v40 = vpack.c.bf16 %v1113_v39, %v1107_v28  ;;  %v1115_v44 = vpop.f32.mrb[45].mxu0 }
 0x49c   :  { %v1326_v2 = vmul.f32 %v2810_v56, %v1115_v44  ;;  %v2092_v41 = vpack.c.bf16 %v1115_v44, %v1109_v20 }
 0x49d   :  { %v2062_v18 = vpack.c.bf16 %v1325_v54, %v1323_v0 }
 0x49e   :  { %v2060_v38 = vpack.c.bf16 %v1326_v2, %v1324_v37  ;;  %v1119_v22 = vpop.f32.mrb[46].mxu0 }
 0x49f   :  { %v1327_v45 = vmul.f32 %v2812_v23, %v1119_v22  ;;  %v1121_v25 = vpop.f32.mrb[47].mxu0  ;;  %v2237_v23 = vld [vmem:[%s3229_s6] sm:$0x3] }
 0x4a0   :  { %v1328_v46 = vmul.f32 %v2814_v57, %v1121_v25  ;;  %2061 = vmatprep.subr.bf16.mxu0 %v2060_v38  ;;  %v1513_v57 = vld [vmem:[%s3231_s8 + $0xb0] sm:$0xff] }
 0x4a1   :  { %2063 = vmatpush1.bf16.msra.mxu0 %v2062_v18 }
 0x4a2   :  { %v1125_v48 = vpop.f32.mrb[48].mxu0 }
 0x4a3   :  { %v1329_v1 = vmul.f32 %v2816_v59, %v1125_v48  ;;  %v2098_v34 = vpack.c.bf16 %v1125_v48, %v1119_v22  ;;  %v1127_v53 = vpop.f32.mrb[49].mxu0  ;;  %v1514_v59 = vld [vmem:[%s3231_s8 + $0xb8] sm:$0xff] }
 0x4a4   :  { %v1330_v13 = vmul.f32 %v2818_v61, %v1127_v53  ;;  %v2096_v5 = vpack.c.bf16 %v1127_v53, %v1121_v25  ;;  %v2112_v61 = vpack.c.bf16 %v1514_v59, %v1513_v57 }
 0x4a5   :  { %v2066_v56 = vpack.c.bf16 %v1329_v1, %v1327_v45 }
 0x4a6   :  { %v2064_v17 = vpack.c.bf16 %v1330_v13, %v1328_v46  ;;  %2113 = vmatprep.subr.bf16.mxu1 %v2112_v61 }
 0x4a8   :  { %2065 = vmatprep.subr.bf16.mxu0 %v2064_v17 }
 0x4a9   :  { %2067 = vmatpush1.bf16.msra.mxu0 %v2066_v56 }
 0x4aa   :  { %2069 = vmatprep.subr.bf16.mxu0 %v2068_v16  ;;  %v1517_v16 = vld [vmem:[%s3231_s8 + $0xd0] sm:$0xff] }
 0x4ab   :  { %v2120_v32 = vpack.c.bf16 %v1518_v4, %v1517_v16 }
 0x4ac   :  { %1396 = vmatmul.mubr.f32.vlgmr.msra.gmra.mrb[50].mxu0 %v2237_v23 }
 0x4ad   :  { %2071 = vmatpush1.bf16.msra.mxu0 %v2070_v55  ;;  %1466 = vmatprep.mubr.f32.mxu0 %v2288_v50  ;;  %v1500_v55 = vld [vmem:[%s3231_s8 + $0x48] sm:$0xff] }
 0x4ae   :  { %2073 = vmatprep.subr.bf16.mxu0 %v2072_v3  ;;  %v2118_v11 = vpack.c.bf16 %v1500_v55, %v1499_v29  ;;  %v1519_v3 = vld [vmem:[%s3231_s8 + $0xe0] sm:$0xff] }
 0x4af   :  { %v2124_v62 = vpack.c.bf16 %v1520_v36, %v1519_v3 }
 0x4b1   :  { %2075 = vmatpush1.bf16.msra.mxu0 %v2074_v42  ;;  %v1501_v42 = vld [vmem:[%s3231_s8 + $0x50] sm:$0xff] }
 0x4b2   :  { %2077 = vmatprep.subr.bf16.mxu0 %v2076_v10  ;;  %v2122_v7 = vpack.c.bf16 %v1502_v9, %v1501_v42 }
 0x4b5   :  { %2079 = vmatpush1.bf16.msra.mxu0 %v2078_v14  ;;  %v1503_v14 = vld [vmem:[%s3231_s8 + $0x60] sm:$0xff] }
 0x4b6   :  { %2081 = vmatprep.subr.bf16.mxu0 %v2080_v63  ;;  %v2126_v10 = vpack.c.bf16 %v1504_v6, %v1503_v14 }
 0x4b9   :  { %2083 = vmatpush1.bf16.msra.mxu0 %v2082_v58  ;;  %v1505_v58 = vld [vmem:[%s3231_s8 + $0x70] sm:$0xff] }
 0x4ba   :  { %2085 = vmatprep.subr.bf16.mxu0 %v2084_v30  ;;  %v2130_v63 = vpack.c.bf16 %v1506_v51, %v1505_v58 }
 0x4bd   :  { %2087 = vmatpush1.bf16.msra.mxu0 %v2086_v21 }
 0x4be   :  { %2089 = vmatprep.subr.bf16.mxu0 %v2088_v24 }
 0x4c1   :  { %2091 = vmatpush1.bf16.msra.mxu0 %v2090_v47  ;;  %v1476_v47 = vshrl.u32 %v1475_v35, 7 }
 0x4c2   :  { %2093 = vmatprep.subr.bf16.mxu0 %v2092_v41 }
 0x4c3   :  { %v1477_v26 = vsub.s32 0, %v1476_v47  ;;  %v1481_v24 = vsub.s32 1, %v1476_v47 }
 0x4c5   :  { %2095 = vmatpush1.bf16.msra.mxu0 %v2094_v40  ;;  %v1478_v27 = vrot.slane %v1473_v12, %v1477_v26  ;;  %v1482_v60 = vrot.slane %v1473_v12, %v1481_v24 }
 0x4c6   :  { %2097 = vmatprep.subr.bf16.mxu0 %v2096_v5 }
 0x4c9   :  { %2099 = vmatpush1.bf16.msra.mxu0 %v2098_v34 }
 0x4ca   :  { %1598 = vmatprep.subr.mxu0 %v2895_v31  ;;  %v1498_v31 = vld [vmem:[%s3231_s8 + $0x38] sm:$0xff] }
 0x4cc   :  { %1467 = vmatmul.mubr.f32.vlgmr.msra.gmra.mrb[52].mxu0 %v2237_v23 }
 0x4cd   :  { %1599 = vmatpush1.msra.mxu0 %v2903_v52  ;;  %1662 = vmatprep.mubr.f32.mxu0 %v2288_v50  ;;  %v1515_v50 = vld [vmem:[%s3231_s8 + $0xc0] sm:$0xff]  ;;  %v2114_v52 = vpack.c.bf16 %v1498_v31, %v1497_v8  ;;  %s1701_s8 = sshll.u32 %s2289_s5, 4  ;;  %s1702_s8 = int_to_ptr.vmem [resolvable:$true] %s1701_s8 }
 0x4ce   :  { %v2116_v15 = vpack.c.bf16 %v1516_v43, %v1515_v50  ;;  %s2238_s22 = scalar_lea.vmem %s1702_s8, 32  ;;  %p2243_p1 = scmp.lt.s32.totalorder %s1702_s8, %s1702_s8 }
 0x4cf   :  { %2115 = vmatpush3.bf16.msra.mxu1 %v2114_v52  ;;  %p2239_p0 = scmp.ne.s32.totalorder %s1702_s8, %s2238_s22  ;;  %p2244_p2 = scmp.lt.s32.totalorder %s2238_s22, %s2238_s22 }
 0x4d0   :  { %2117 = vmatprep.subr.bf16.mxu1 %v2116_v15 }
 0x4d1   :  { %p2245_p3 = por %p2244_p2, %p2243_p1 }
 0x4d3   :  { %2119 = vmatpush3.bf16.msra.mxu1 %v2118_v11  ;;  %p2246_p4 = pnand %p2245_p3, %p2239_p0 }
 0x4d4   :  { %2121 = vmatprep.subr.bf16.mxu1 %v2120_v32 }
 0x4d7   :  { %2123 = vmatpush3.bf16.msra.mxu1 %v2122_v7 }
 0x4d8   :  { %2125 = vmatprep.subr.bf16.mxu1 %v2124_v62 }
 0x4db   :  { %2127 = vmatpush3.bf16.msra.mxu1 %v2126_v10 }
 0x4dc   :  { %2129 = vmatprep.subr.bf16.mxu1 %v2128_v33 }
 0x4df   :  { %2131 = vmatpush3.bf16.msra.mxu1 %v2130_v63 }
 0x57f   :  { %v1397_v21 = vpop.f32.mrb[50].mxu0 }
 0x580   :  { %v1399_v30 = vpop.f32.mrb[51].mxu0 }
 0x59f   :  { %v1468_v28 = vpop.f32.mrb[52].mxu0 }
 0x5a0   :  { %v1485_v0 = vmul.f32 %v1478_v27, %v1468_v28  ;;  %v1470_v20 = vpop.f32.mrb[53].mxu0 }
 0x5a1   :  { %v1486_v37 = vmul.f32 %v1482_v60, %v1470_v20 }
 0x5a2   :  { %v1487_v39 = vsub.f32 %v1397_v21, %v1485_v0 }
 0x5a3   :  { %v1488_v54 = vsub.f32 %v1399_v30, %v1486_v37 }
 0x5a4   :  { %v1489_v44 = vmul.f32 %v1487_v39, %v1487_v39 }
 0x5a5   :  { %v1490_v40 = vmul.f32 %v1488_v54, %v1488_v54 }
 0x5a7   :  { %1587 = vmatprep.mubr.f32.mxu1 %v1490_v40 }
 0x5a8   :  { %1588 = vmatmul.mubr.f32.vlgmr.msra.gmra.mrb[50].mxu1 %v1489_v44 }
 0x67b   :  { %v1883_v2 = vpop.f32.mrb[50].mxu1 }
 0x67c   :  { %v1884_v41 = vpop.f32.mrb[51].mxu1 }
 0x67d   :  { %v1885_v18 = vadd.f32 %v1884_v41, %v1883_v2 }
 0x67f   :  { %v1593_v38 = vmax.f32 %v1885_v18, 1e-24 }
 0x681   :  { %2233 = vrsqrt.f32 %v1593_v38 }
 0x68b   :  { %v2234_v22 = vpop.eup %2233 }
 0x68c   :  { %1790 = vmatmul.mubr.msk.f32.vlgmr.msra.gmra.mrb[54].mxu0 %vm66_vm0, %v2234_v22 }
 0x75f   :  { %v1664_v45 = vpop.f32.mrb[54].mxu0 }
 0x760   :  { %v1669_v25 = vmul.f32 %v1664_v45, %v1487_v39  ;;  %v1666_v46 = vpop.f32.mrb[55].mxu0 }
 0x761   :  { %v1670_v48 = vmul.f32 %v1666_v46, %v1488_v54 }
 0x762   :  { %v1671_v1 = vmul.f32 %v1669_v25, %v1669_v25 }
 0x763   :  { %v1672_v34 = vmul.f32 %v1670_v48, %v1670_v48 }
 0x764   :  { %v1674_v53 = vsel %vm1673_vm3, %v1671_v1, 0.0 }
 0x765   :  { %v1675_v13 = vsel %vm1673_vm3, %v1672_v34, 0.0 }
 0x766   :  { %v1676_v5 = vadd.f32 %v1675_v13, %v1674_v53 }
 0x768   :  { %1677 = vadd.xlane.f32.xlu0 %v1676_v5 }
 0x769   :  { %2249 = shalt.err (!%p2246_p4)
}
 0x76a   :  { %s2250_s25 = scalar_lea.hbm %s3234_s11, 32 }
 0x76b   :  { %p2251_p5 = scmp.ne.s32.totalorder %s3234_s11, %s2250_s25  ;;  %p2254_p6 = scmp.lt.u32.totalorder %s2250_s25, %s3234_s11 }
 0x76d   :  { %p2256_p7 = pnand %p2254_p6, %p2251_p5 }
 0x76f   :  { %2259 = shalt.err (!%p2256_p7)
}
 0x770   :  { %1704 = dma.vmem_to_hbm [thread:$0]  %s1702_s8, 32, %s3234_s11, [#allocation3]  }
 0x771   :  { %s2290_s29 = smov [#allocation4]  }
 0x772   :  { %s1711_s3 = sshll.u32 %s2290_s29, 4  ;;  %s1712_s3 = int_to_ptr.vmem [resolvable:$true] %s1711_s3 }
 0x773   :  { %s2260_s6 = scalar_lea.vmem %s1712_s3, 64  ;;  %p2265_p9 = scmp.lt.s32.totalorder %s1712_s3, %s1712_s3 }
 0x774   :  { %p2261_p8 = scmp.ne.s32.totalorder %s1712_s3, %s2260_s6  ;;  %p2266_p10 = scmp.lt.s32.totalorder %s2260_s6, %s2260_s6 }
 0x776   :  { %p2267_p11 = por %p2266_p10, %p2265_p9 }
 0x778   :  { %p2268_p12 = pnand %p2267_p11, %p2261_p8 }
 0x7f5   :  { %v1678_v56 = vpop.xlane.xlu0 %1677 }
 0x7f6   :  { %v1679_v17 = vmax.f32 %v1678_v56, 1e-24 }
 0x7f8   :  { %2235 = vrsqrt.f32 %v1679_v17 }
 0x802   :  { %v2236_v23 = vpop.eup %2235 }
 0x803   :  { %v1681_v57 = vmul.f32 %v2236_v23, %v1669_v25  ;;  %v1682_v59 = vmul.f32 %v2236_v23, %v1670_v48 }
 0x805   :  { %v1685_v61 = vcombine.low %v1681_v57, %v1682_v59 }
 0x807   :  { %1791 = vst.sshfl [vmem:[#allocation4] sm:$0x33 pattern:$0x76325410] %v1685_v61 }
 0x808   :  { %2271 = shalt.err (!%p2268_p12)
}
 0x809   :  { %s2272_s30 = scalar_lea.hbm %s3235_s12, 64 }
 0x80a   :  { %p2273_p13 = scmp.ne.s32.totalorder %s3235_s12, %s2272_s30  ;;  %p2276_p0 = scmp.lt.u32.totalorder %s2272_s30, %s3235_s12 }
 0x80c   :  { %p2278_p1 = pnand %p2276_p0, %p2273_p13 }
 0x80e   :  { %2281 = shalt.err (!%p2278_p1)
}
 0x80f   :  { %1714 = dma.vmem_to_hbm [thread:$0]  %s1712_s3, 64, %s3235_s12, [#allocation5]  }
 0x810   :  { %2282 = dma.done.wait [#allocation3], 32  }
 0x811   :  { %2283 = vsyncadd [#allocation3], 4294967264 }
 0x812   :  { %2284 = dma.done.wait [#allocation5], 64  }
 0x813   :  { %2285 = vsyncadd [#allocation5], 4294967232 }
 0x814   :  { %1721 = vsyncpa [#allocation3], 1 }
 0x815   :  { %1722 = vsyncpa [#allocation5], 1 }

</bundles_post_ra>
